<compile_context>
chip_gen: v7x
topology: tpu7x:2x2x1
jax: 0.10.0
libtpu: 0.0.40
codegen_flags: <defaults>
</compile_context>

<pallas_src>
import functools

import jax
import jax.numpy as jnp
import numpy as np
from jax import lax
from jax.experimental import pallas as pl
from jax.experimental.pallas import tpu as pltpu


def _lstm_kernel(xg_ref, len_ref, whh0_ref, w1cat_ref, b1_ref,
                 wfc_ref, bfc_ref, out_ref, *, hidden_size, seq_len):
    H = hidden_size
    Bt = len_ref.shape[0]                       # batch-tile size

    lengths = len_ref[...]                      # (Bt, 1) int32, hoisted once
    whh0 = whh0_ref[...]                        # (H, 4H)
    w1cat = w1cat_ref[...]                      # (2H, 4H) = [W_ih_l1; W_hh_l1]
    b1 = b1_ref[...]                            # (1, 4H)

    # Lane-iota mask selecting the tanh ("g") gate quarter: lanes [2H, 3H).
    lane = lax.broadcasted_iota(jnp.int32, (Bt, 4 * H), 1)
    tanh_zone = (lane >= 2 * H) & (lane < 3 * H)

    def gate_act(g):
        # sigmoid on i/f/o quarters, tanh on g quarter: 2 full-vreg EUP ops +
        # 1 select instead of 4 quarter-wide transcendental calls.
        return jnp.where(tanh_zone, jnp.tanh(g), jax.nn.sigmoid(g))

    def step(t, carry):
        h1, c1, h2, c2 = carry
        mask = lengths > t                      # (Bt, 1) packed-seq validity

        # ---- LSTM layer 0 (input projection pre-hoisted into xg) ----
        g = xg_ref[t] + jnp.dot(h1, whh0, preferred_element_type=jnp.float32)
        a = gate_act(g)
        i_g = a[:, 0:H]
        f_g = a[:, H:2 * H]
        g_g = a[:, 2 * H:3 * H]
        o_g = a[:, 3 * H:4 * H]
        c1n = f_g * c1 + i_g * g_g
        h1n = o_g * jnp.tanh(c1n)
        c1 = jnp.where(mask, c1n, c1)
        h1 = jnp.where(mask, h1n, h1)

        # ---- LSTM layer 1 (fused input/hidden matmul, K = 2H) ----
        g2 = jnp.dot(jnp.concatenate([h1, h2], axis=1), w1cat,
                     preferred_element_type=jnp.float32) + b1
        a2 = gate_act(g2)
        i2 = a2[:, 0:H]
        f2 = a2[:, H:2 * H]
        gg2 = a2[:, 2 * H:3 * H]
        o2 = a2[:, 3 * H:4 * H]
        c2n = f2 * c2 + i2 * gg2
        h2n = o2 * jnp.tanh(c2n)
        c2 = jnp.where(mask, c2n, c2)
        h2 = jnp.where(mask, h2n, h2)
        return h1, c1, h2, c2

    zeros = jnp.zeros((Bt, H), jnp.float32)
    _, _, h2, _ = lax.fori_loop(0, seq_len, step,
                                (zeros, zeros, zeros, zeros), unroll=True)

    # ---- final Linear head on the last layer's final hidden state ----
    # (output lane-padded to 128 -> single unmasked, lane-dense store)
    out_ref[...] = (jnp.dot(h2, wfc_ref[...],
                            preferred_element_type=jnp.float32)
                    + bfc_ref[...])


def lstm_forward(x, lengths, params, hidden_size, output_size):
    """x: (B, T, I) float32, lengths: (B,) int.  Returns (B, output_size)."""
    B, T, I = x.shape
    H = hidden_size
    O_PAD = 128                                  # lane-dense output width

    x_tm = jnp.transpose(x, (1, 0, 2)).astype(jnp.float32)   # (T, B, I)
    lengths2d = lengths.astype(jnp.int32).reshape(B, 1)       # (B, 1)

    # --- weight prep (pre-transposed so the kernel does plain x @ W) ---
    wih0 = params["w_ih_l0"].T                                # (I, 4H)
    whh0 = params["w_hh_l0"].T                                # (H, 4H)
    b0 = (params["b_ih_l0"] + params["b_hh_l0"]).reshape(1, 4 * H)
    w1cat = jnp.concatenate([params["w_ih_l1"].T,
                             params["w_hh_l1"].T], axis=0)    # (2H, 4H)
    b1 = (params["b_ih_l1"] + params["b_hh_l1"]).reshape(1, 4 * H)

    wfc_pad = jnp.zeros((H, O_PAD), jnp.float32).at[:, :output_size].set(
        params["fc_w"].T)                                     # (H, 128)
    bfc_pad = jnp.zeros((1, O_PAD), jnp.float32).at[:, :output_size].set(
        params["fc_b"].reshape(1, output_size))               # (1, 128)

    # --- hoist layer-0 input projection out of the recurrence:
    #     one (T*B, I) @ (I, 4H) matmul for all timesteps, done by XLA ---
    xg = (x_tm.reshape(T * B, I) @ wih0 + b0).reshape(T, B, 4 * H)

    # Batch tile = whole batch at these sizes; the "parallel" batch grid axis
    # lets the same structure shard across v7x's two TensorCores once B grows
    # (use a multiple-of-8 tile then).
    BB = B
    grid = (pl.cdiv(B, BB),)

    kernel = functools.partial(_lstm_kernel, hidden_size=H, seq_len=T)

    def full_spec(a):
        nd = a.ndim
        return pl.BlockSpec(a.shape, lambda b, _nd=nd: (0,) * _nd)

    out = pl.pallas_call(
        kernel,
        out_shape=jax.ShapeDtypeStruct((B, O_PAD), jnp.float32),
        grid_spec=pltpu.PrefetchScalarGridSpec(
            num_scalar_prefetch=0,
            grid=grid,
            in_specs=[
                pl.BlockSpec((T, BB, 4 * H), lambda b: (0, b, 0)),   # xg
                pl.BlockSpec((BB, 1), lambda b: (b, 0)),             # lengths
                full_spec(whh0), full_spec(w1cat), full_spec(b1),
                full_spec(wfc_pad), full_spec(bfc_pad),
            ],
            out_specs=pl.BlockSpec((BB, O_PAD), lambda b: (b, 0)),
        ),
        compiler_params=pltpu.CompilerParams(
            dimension_semantics=("parallel",)),
    )(xg, lengths2d, whh0, w1cat, b1, wfc_pad, bfc_pad)

    return out[:, :output_size]


def init_params(key, input_size, hidden_size, output_size):
    """Deterministic init mimicking nn.LSTM / nn.Linear uniform(-k, k)."""
    H = hidden_size
    k_lstm = 1.0 / np.sqrt(H)
    k_fc = 1.0 / np.sqrt(H)
    shapes = {
        "w_ih_l0": (4 * H, input_size),
        "w_hh_l0": (4 * H, H),
        "b_ih_l0": (4 * H,),
        "b_hh_l0": (4 * H,),
        "w_ih_l1": (4 * H, H),
        "w_hh_l1": (4 * H, H),
        "b_ih_l1": (4 * H,),
        "b_hh_l1": (4 * H,),
        "fc_w": (output_size, H),
        "fc_b": (output_size,),
    }
    params = {}
    keys = jax.random.split(key, len(shapes))
    for (name, shp), k in zip(shapes.items(), keys):
        bound = k_fc if name.startswith("fc") else k_lstm
        params[name] = jax.random.uniform(
            k, shp, dtype=jnp.float32, minval=-bound, maxval=bound)
    return params


def reference_forward(x, lengths, params, hidden_size, output_size):
    """Pure-JAX reference reproducing pack_padded_sequence + 2-layer LSTM."""
    B, T, I = x.shape
    H = hidden_size
    h1 = jnp.zeros((B, H), jnp.float32)
    c1 = jnp.zeros((B, H), jnp.float32)
    h2 = jnp.zeros((B, H), jnp.float32)
    c2 = jnp.zeros((B, H), jnp.float32)
    for t in range(T):
        mask = (lengths > t).reshape(B, 1)
        xt = x[:, t, :]
        g = (xt @ params["w_ih_l0"].T + h1 @ params["w_hh_l0"].T
             + params["b_ih_l0"] + params["b_hh_l0"])
        i_g = jax.nn.sigmoid(g[:, 0:H]); f_g = jax.nn.sigmoid(g[:, H:2 * H])
        g_g = jnp.tanh(g[:, 2 * H:3 * H]); o_g = jax.nn.sigmoid(g[:, 3 * H:4 * H])
        c1n = f_g * c1 + i_g * g_g
        h1n = o_g * jnp.tanh(c1n)
        c1 = jnp.where(mask, c1n, c1); h1 = jnp.where(mask, h1n, h1)
        g2 = (h1 @ params["w_ih_l1"].T + h2 @ params["w_hh_l1"].T
              + params["b_ih_l1"] + params["b_hh_l1"])
        i2 = jax.nn.sigmoid(g2[:, 0:H]); f2 = jax.nn.sigmoid(g2[:, H:2 * H])
        gg2 = jnp.tanh(g2[:, 2 * H:3 * H]); o2 = jax.nn.sigmoid(g2[:, 3 * H:4 * H])
        c2n = f2 * c2 + i2 * gg2
        h2n = o2 * jnp.tanh(c2n)
        c2 = jnp.where(mask, c2n, c2); h2 = jnp.where(mask, h2n, h2)
    return h2 @ params["fc_w"].T + params["fc_b"]


if __name__ == "__main__":
    input_size, hidden_size, output_size = 8, 32, 1
    B, T = 4, 10

    key = jax.random.PRNGKey(0)
    k_x, k_p = jax.random.split(key)
    x = jax.random.normal(k_x, (B, T, input_size), dtype=jnp.float32)
    lengths = jnp.array([10, 7, 3, 1], dtype=jnp.int32)   # variable seq lengths

    params = init_params(k_p, input_size, hidden_size, output_size)

    out = lstm_forward(x, lengths, params, hidden_size, output_size)
    out = jax.block_until_ready(out)

    ref = reference_forward(x, lengths, params, hidden_size, output_size)
    np.testing.assert_allclose(np.asarray(out), np.asarray(ref),
                               rtol=1e-3, atol=1e-3)
    print("KERNEL_OK")
</pallas_src>

<mosaic_0001>
module attributes {stable_mosaic.version = 11 : i64} {
  func.func @_lstm_kernel(%arg0: i32, %arg1: memref<10x4x128xf32, #tpu.memory_space<vmem>>, %arg2: memref<4x1xi32, #tpu.memory_space<vmem>>, %arg3: memref<32x128xf32, #tpu.memory_space<vmem>>, %arg4: memref<64x128xf32, #tpu.memory_space<vmem>>, %arg5: memref<1x128xf32, #tpu.memory_space<vmem>>, %arg6: memref<32x128xf32, #tpu.memory_space<vmem>>, %arg7: memref<1x128xf32, #tpu.memory_space<vmem>>, %arg8: memref<4x128xf32, #tpu.memory_space<vmem>>) attributes {dimension_semantics = [#tpu.dimension_semantics<parallel>], iteration_bounds = array<i64: 1>, scalar_prefetch = 0 : i64, scratch_operands = 0 : i64, tpu.core_type = #tpu.core_type<tc>, window_params = [{transform_indices = @transform_0, window_bounds = array<i64: 10, 4, 128>}, {transform_indices = @transform_1, window_bounds = array<i64: 4, 1>}, {pipeline_mode = #tpu.pipeline_mode<synchronous>, transform_indices = @transform_2, window_bounds = array<i64: 32, 128>}, {pipeline_mode = #tpu.pipeline_mode<synchronous>, transform_indices = @transform_3, window_bounds = array<i64: 64, 128>}, {pipeline_mode = #tpu.pipeline_mode<synchronous>, transform_indices = @transform_4, window_bounds = array<i64: 1, 128>}, {pipeline_mode = #tpu.pipeline_mode<synchronous>, transform_indices = @transform_5, window_bounds = array<i64: 32, 128>}, {pipeline_mode = #tpu.pipeline_mode<synchronous>, transform_indices = @transform_6, window_bounds = array<i64: 1, 128>}, {transform_indices = @transform_7, window_bounds = array<i64: 4, 128>}]} {
    %c0 = arith.constant 0 : index
    %c0_0 = arith.constant 0 : index
    %0 = vector.load %arg2[%c0, %c0_0] : memref<4x1xi32, #tpu.memory_space<vmem>>, vector<4x1xi32>
    %c0_1 = arith.constant 0 : index
    %c0_2 = arith.constant 0 : index
    %1 = vector.load %arg3[%c0_1, %c0_2] : memref<32x128xf32, #tpu.memory_space<vmem>>, vector<32x128xf32>
    %c0_3 = arith.constant 0 : index
    %c0_4 = arith.constant 0 : index
    %2 = vector.load %arg4[%c0_3, %c0_4] : memref<64x128xf32, #tpu.memory_space<vmem>>, vector<64x128xf32>
    %c0_5 = arith.constant 0 : index
    %c0_6 = arith.constant 0 : index
    %3 = vector.load %arg5[%c0_5, %c0_6] : memref<1x128xf32, #tpu.memory_space<vmem>>, vector<1x128xf32>
    %4 = tpu.iota {dimensions = array<i32: 1>} : vector<4x128xi32>
    %c64_i32 = arith.constant 64 : i32
    %5 = vector.broadcast %c64_i32 : i32 to vector<4x128xi32>
    %6 = arith.cmpi sge, %4, %5 : vector<4x128xi32>
    %c96_i32 = arith.constant 96 : i32
    %7 = vector.broadcast %c96_i32 : i32 to vector<4x128xi32>
    %8 = arith.cmpi slt, %4, %7 : vector<4x128xi32>
    %9 = arith.andi %6, %8 : vector<4x128xi1>
    %cst = arith.constant 0.000000e+00 : f32
    %10 = vector.broadcast %cst : f32 to vector<4x32xf32>
    %c0_i32 = arith.constant 0 : i32
    %11 = vector.broadcast %c0_i32 : i32 to vector<4x1xi32>
    %12 = arith.cmpi sgt, %0, %11 : vector<4x1xi32>
    %13 = arith.index_cast %c0_i32 : i32 to index
    %c0_7 = arith.constant 0 : index
    %c0_8 = arith.constant 0 : index
    %14 = vector.load %arg1[%13, %c0_7, %c0_8] : memref<10x4x128xf32, #tpu.memory_space<vmem>>, vector<1x4x128xf32>
    %15 = vector.shape_cast %14 : vector<1x4x128xf32> to vector<4x128xf32>
    %cst_9 = arith.constant dense<0.000000e+00> : vector<4x128xf32>
    %16 = tpu.matmul %10, %1, %cst_9 {dimension_numbers = #tpu.dot_dimension_numbers<[1], [0], [0], [1], [0, 0, 1, 1], [], []>} : vector<4x32xf32>, vector<32x128xf32>, vector<4x128xf32> -> vector<4x128xf32>
    %17 = arith.addf %15, %16 : vector<4x128xf32>
    %18 = math.tanh %17 : vector<4x128xf32>
    %19 = arith.negf %17 : vector<4x128xf32>
    %20 = math.exp %19 : vector<4x128xf32>
    %cst_10 = arith.constant 1.000000e+00 : f32
    %21 = vector.broadcast %cst_10 : f32 to vector<4x128xf32>
    %22 = arith.addf %21, %20 : vector<4x128xf32>
    %23 = arith.divf %21, %22 : vector<4x128xf32>
    %24 = arith.select %9, %18, %23 : vector<4x128xi1>, vector<4x128xf32>
    %25 = vector.extract_strided_slice %24 {offsets = [0, 0], sizes = [4, 32], strides = [1, 1]} : vector<4x128xf32> to vector<4x32xf32>
    %26 = vector.extract_strided_slice %24 {offsets = [0, 32], sizes = [4, 32], strides = [1, 1]} : vector<4x128xf32> to vector<4x32xf32>
    %27 = vector.extract_strided_slice %24 {offsets = [0, 64], sizes = [4, 32], strides = [1, 1]} : vector<4x128xf32> to vector<4x32xf32>
    %28 = vector.extract_strided_slice %24 {offsets = [0, 96], sizes = [4, 32], strides = [1, 1]} : vector<4x128xf32> to vector<4x32xf32>
    %29 = arith.mulf %26, %10 : vector<4x32xf32>
    %30 = arith.mulf %25, %27 : vector<4x32xf32>
    %31 = arith.addf %29, %30 : vector<4x32xf32>
    %32 = math.tanh %31 : vector<4x32xf32>
    %33 = arith.mulf %28, %32 : vector<4x32xf32>
    %34 = vector.shape_cast %12 : vector<4x1xi1> to vector<4x1xi1>
    %35 = vector.broadcast %34 : vector<4x1xi1> to vector<4x32xi1>
    %36 = arith.select %35, %31, %10 : vector<4x32xi1>, vector<4x32xf32>
    %37 = vector.shape_cast %12 : vector<4x1xi1> to vector<4x1xi1>
    %38 = vector.broadcast %37 : vector<4x1xi1> to vector<4x32xi1>
    %39 = arith.select %38, %33, %10 : vector<4x32xi1>, vector<4x32xf32>
    %40 = tpu.concatenate %39, %10 in 1 : vector<4x32xf32>, vector<4x32xf32> -> vector<4x64xf32>
    %cst_11 = arith.constant dense<0.000000e+00> : vector<4x128xf32>
    %41 = tpu.matmul %40, %2, %cst_11 {dimension_numbers = #tpu.dot_dimension_numbers<[1], [0], [0], [1], [0, 0, 1, 1], [], []>} : vector<4x64xf32>, vector<64x128xf32>, vector<4x128xf32> -> vector<4x128xf32>
    %42 = vector.broadcast %3 : vector<1x128xf32> to vector<4x128xf32>
    %43 = arith.addf %41, %42 : vector<4x128xf32>
    %44 = math.tanh %43 : vector<4x128xf32>
    %45 = arith.negf %43 : vector<4x128xf32>
    %46 = math.exp %45 : vector<4x128xf32>
    %cst_12 = arith.constant 1.000000e+00 : f32
    %47 = vector.broadcast %cst_12 : f32 to vector<4x128xf32>
    %48 = arith.addf %47, %46 : vector<4x128xf32>
    %49 = arith.divf %47, %48 : vector<4x128xf32>
    %50 = arith.select %9, %44, %49 : vector<4x128xi1>, vector<4x128xf32>
    %51 = vector.extract_strided_slice %50 {offsets = [0, 0], sizes = [4, 32], strides = [1, 1]} : vector<4x128xf32> to vector<4x32xf32>
    %52 = vector.extract_strided_slice %50 {offsets = [0, 32], sizes = [4, 32], strides = [1, 1]} : vector<4x128xf32> to vector<4x32xf32>
    %53 = vector.extract_strided_slice %50 {offsets = [0, 64], sizes = [4, 32], strides = [1, 1]} : vector<4x128xf32> to vector<4x32xf32>
    %54 = vector.extract_strided_slice %50 {offsets = [0, 96], sizes = [4, 32], strides = [1, 1]} : vector<4x128xf32> to vector<4x32xf32>
    %55 = arith.mulf %52, %10 : vector<4x32xf32>
    %56 = arith.mulf %51, %53 : vector<4x32xf32>
    %57 = arith.addf %55, %56 : vector<4x32xf32>
    %58 = math.tanh %57 : vector<4x32xf32>
    %59 = arith.mulf %54, %58 : vector<4x32xf32>
    %60 = vector.shape_cast %12 : vector<4x1xi1> to vector<4x1xi1>
    %61 = vector.broadcast %60 : vector<4x1xi1> to vector<4x32xi1>
    %62 = arith.select %61, %57, %10 : vector<4x32xi1>, vector<4x32xf32>
    %63 = vector.shape_cast %12 : vector<4x1xi1> to vector<4x1xi1>
    %64 = vector.broadcast %63 : vector<4x1xi1> to vector<4x32xi1>
    %65 = arith.select %64, %59, %10 : vector<4x32xi1>, vector<4x32xf32>
    %c1_i32 = arith.constant 1 : i32
    %66 = vector.broadcast %c1_i32 : i32 to vector<4x1xi32>
    %67 = arith.cmpi sgt, %0, %66 : vector<4x1xi32>
    %68 = arith.index_cast %c1_i32 : i32 to index
    %c0_13 = arith.constant 0 : index
    %c0_14 = arith.constant 0 : index
    %69 = vector.load %arg1[%68, %c0_13, %c0_14] : memref<10x4x128xf32, #tpu.memory_space<vmem>>, vector<1x4x128xf32>
    %70 = vector.shape_cast %69 : vector<1x4x128xf32> to vector<4x128xf32>
    %cst_15 = arith.constant dense<0.000000e+00> : vector<4x128xf32>
    %71 = tpu.matmul %39, %1, %cst_15 {dimension_numbers = #tpu.dot_dimension_numbers<[1], [0], [0], [1], [0, 0, 1, 1], [], []>} : vector<4x32xf32>, vector<32x128xf32>, vector<4x128xf32> -> vector<4x128xf32>
    %72 = arith.addf %70, %71 : vector<4x128xf32>
    %73 = math.tanh %72 : vector<4x128xf32>
    %74 = arith.negf %72 : vector<4x128xf32>
    %75 = math.exp %74 : vector<4x128xf32>
    %cst_16 = arith.constant 1.000000e+00 : f32
    %76 = vector.broadcast %cst_16 : f32 to vector<4x128xf32>
    %77 = arith.addf %76, %75 : vector<4x128xf32>
    %78 = arith.divf %76, %77 : vector<4x128xf32>
    %79 = arith.select %9, %73, %78 : vector<4x128xi1>, vector<4x128xf32>
    %80 = vector.extract_strided_slice %79 {offsets = [0, 0], sizes = [4, 32], strides = [1, 1]} : vector<4x128xf32> to vector<4x32xf32>
    %81 = vector.extract_strided_slice %79 {offsets = [0, 32], sizes = [4, 32], strides = [1, 1]} : vector<4x128xf32> to vector<4x32xf32>
    %82 = vector.extract_strided_slice %79 {offsets = [0, 64], sizes = [4, 32], strides = [1, 1]} : vector<4x128xf32> to vector<4x32xf32>
    %83 = vector.extract_strided_slice %79 {offsets = [0, 96], sizes = [4, 32], strides = [1, 1]} : vector<4x128xf32> to vector<4x32xf32>
    %84 = arith.mulf %81, %36 : vector<4x32xf32>
    %85 = arith.mulf %80, %82 : vector<4x32xf32>
    %86 = arith.addf %84, %85 : vector<4x32xf32>
    %87 = math.tanh %86 : vector<4x32xf32>
    %88 = arith.mulf %83, %87 : vector<4x32xf32>
    %89 = vector.shape_cast %67 : vector<4x1xi1> to vector<4x1xi1>
    %90 = vector.broadcast %89 : vector<4x1xi1> to vector<4x32xi1>
    %91 = arith.select %90, %86, %36 : vector<4x32xi1>, vector<4x32xf32>
    %92 = vector.shape_cast %67 : vector<4x1xi1> to vector<4x1xi1>
    %93 = vector.broadcast %92 : vector<4x1xi1> to vector<4x32xi1>
    %94 = arith.select %93, %88, %39 : vector<4x32xi1>, vector<4x32xf32>
    %95 = tpu.concatenate %94, %65 in 1 : vector<4x32xf32>, vector<4x32xf32> -> vector<4x64xf32>
    %cst_17 = arith.constant dense<0.000000e+00> : vector<4x128xf32>
    %96 = tpu.matmul %95, %2, %cst_17 {dimension_numbers = #tpu.dot_dimension_numbers<[1], [0], [0], [1], [0, 0, 1, 1], [], []>} : vector<4x64xf32>, vector<64x128xf32>, vector<4x128xf32> -> vector<4x128xf32>
    %97 = vector.broadcast %3 : vector<1x128xf32> to vector<4x128xf32>
    %98 = arith.addf %96, %97 : vector<4x128xf32>
    %99 = math.tanh %98 : vector<4x128xf32>
    %100 = arith.negf %98 : vector<4x128xf32>
    %101 = math.exp %100 : vector<4x128xf32>
    %cst_18 = arith.constant 1.000000e+00 : f32
    %102 = vector.broadcast %cst_18 : f32 to vector<4x128xf32>
    %103 = arith.addf %102, %101 : vector<4x128xf32>
    %104 = arith.divf %102, %103 : vector<4x128xf32>
    %105 = arith.select %9, %99, %104 : vector<4x128xi1>, vector<4x128xf32>
    %106 = vector.extract_strided_slice %105 {offsets = [0, 0], sizes = [4, 32], strides = [1, 1]} : vector<4x128xf32> to vector<4x32xf32>
    %107 = vector.extract_strided_slice %105 {offsets = [0, 32], sizes = [4, 32], strides = [1, 1]} : vector<4x128xf32> to vector<4x32xf32>
    %108 = vector.extract_strided_slice %105 {offsets = [0, 64], sizes = [4, 32], strides = [1, 1]} : vector<4x128xf32> to vector<4x32xf32>
    %109 = vector.extract_strided_slice %105 {offsets = [0, 96], sizes = [4, 32], strides = [1, 1]} : vector<4x128xf32> to vector<4x32xf32>
    %110 = arith.mulf %107, %62 : vector<4x32xf32>
    %111 = arith.mulf %106, %108 : vector<4x32xf32>
    %112 = arith.addf %110, %111 : vector<4x32xf32>
    %113 = math.tanh %112 : vector<4x32xf32>
    %114 = arith.mulf %109, %113 : vector<4x32xf32>
    %115 = vector.shape_cast %67 : vector<4x1xi1> to vector<4x1xi1>
    %116 = vector.broadcast %115 : vector<4x1xi1> to vector<4x32xi1>
    %117 = arith.select %116, %112, %62 : vector<4x32xi1>, vector<4x32xf32>
    %118 = vector.shape_cast %67 : vector<4x1xi1> to vector<4x1xi1>
    %119 = vector.broadcast %118 : vector<4x1xi1> to vector<4x32xi1>
    %120 = arith.select %119, %114, %65 : vector<4x32xi1>, vector<4x32xf32>
    %c2_i32 = arith.constant 2 : i32
    %121 = vector.broadcast %c2_i32 : i32 to vector<4x1xi32>
    %122 = arith.cmpi sgt, %0, %121 : vector<4x1xi32>
    %123 = arith.index_cast %c2_i32 : i32 to index
    %c0_19 = arith.constant 0 : index
    %c0_20 = arith.constant 0 : index
    %124 = vector.load %arg1[%123, %c0_19, %c0_20] : memref<10x4x128xf32, #tpu.memory_space<vmem>>, vector<1x4x128xf32>
    %125 = vector.shape_cast %124 : vector<1x4x128xf32> to vector<4x128xf32>
    %cst_21 = arith.constant dense<0.000000e+00> : vector<4x128xf32>
    %126 = tpu.matmul %94, %1, %cst_21 {dimension_numbers = #tpu.dot_dimension_numbers<[1], [0], [0], [1], [0, 0, 1, 1], [], []>} : vector<4x32xf32>, vector<32x128xf32>, vector<4x128xf32> -> vector<4x128xf32>
    %127 = arith.addf %125, %126 : vector<4x128xf32>
    %128 = math.tanh %127 : vector<4x128xf32>
    %129 = arith.negf %127 : vector<4x128xf32>
    %130 = math.exp %129 : vector<4x128xf32>
    %cst_22 = arith.constant 1.000000e+00 : f32
    %131 = vector.broadcast %cst_22 : f32 to vector<4x128xf32>
    %132 = arith.addf %131, %130 : vector<4x128xf32>
    %133 = arith.divf %131, %132 : vector<4x128xf32>
    %134 = arith.select %9, %128, %133 : vector<4x128xi1>, vector<4x128xf32>
    %135 = vector.extract_strided_slice %134 {offsets = [0, 0], sizes = [4, 32], strides = [1, 1]} : vector<4x128xf32> to vector<4x32xf32>
    %136 = vector.extract_strided_slice %134 {offsets = [0, 32], sizes = [4, 32], strides = [1, 1]} : vector<4x128xf32> to vector<4x32xf32>
    %137 = vector.extract_strided_slice %134 {offsets = [0, 64], sizes = [4, 32], strides = [1, 1]} : vector<4x128xf32> to vector<4x32xf32>
    %138 = vector.extract_strided_slice %134 {offsets = [0, 96], sizes = [4, 32], strides = [1, 1]} : vector<4x128xf32> to vector<4x32xf32>
    %139 = arith.mulf %136, %91 : vector<4x32xf32>
    %140 = arith.mulf %135, %137 : vector<4x32xf32>
    %141 = arith.addf %139, %140 : vector<4x32xf32>
    %142 = math.tanh %141 : vector<4x32xf32>
    %143 = arith.mulf %138, %142 : vector<4x32xf32>
    %144 = vector.shape_cast %122 : vector<4x1xi1> to vector<4x1xi1>
    %145 = vector.broadcast %144 : vector<4x1xi1> to vector<4x32xi1>
    %146 = arith.select %145, %141, %91 : vector<4x32xi1>, vector<4x32xf32>
    %147 = vector.shape_cast %122 : vector<4x1xi1> to vector<4x1xi1>
    %148 = vector.broadcast %147 : vector<4x1xi1> to vector<4x32xi1>
    %149 = arith.select %148, %143, %94 : vector<4x32xi1>, vector<4x32xf32>
    %150 = tpu.concatenate %149, %120 in 1 : vector<4x32xf32>, vector<4x32xf32> -> vector<4x64xf32>
    %cst_23 = arith.constant dense<0.000000e+00> : vector<4x128xf32>
    %151 = tpu.matmul %150, %2, %cst_23 {dimension_numbers = #tpu.dot_dimension_numbers<[1], [0], [0], [1], [0, 0, 1, 1], [], []>} : vector<4x64xf32>, vector<64x128xf32>, vector<4x128xf32> -> vector<4x128xf32>
    %152 = vector.broadcast %3 : vector<1x128xf32> to vector<4x128xf32>
    %153 = arith.addf %151, %152 : vector<4x128xf32>
    %154 = math.tanh %153 : vector<4x128xf32>
    %155 = arith.negf %153 : vector<4x128xf32>
    %156 = math.exp %155 : vector<4x128xf32>
    %cst_24 = arith.constant 1.000000e+00 : f32
    %157 = vector.broadcast %cst_24 : f32 to vector<4x128xf32>
    %158 = arith.addf %157, %156 : vector<4x128xf32>
    %159 = arith.divf %157, %158 : vector<4x128xf32>
    %160 = arith.select %9, %154, %159 : vector<4x128xi1>, vector<4x128xf32>
    %161 = vector.extract_strided_slice %160 {offsets = [0, 0], sizes = [4, 32], strides = [1, 1]} : vector<4x128xf32> to vector<4x32xf32>
    %162 = vector.extract_strided_slice %160 {offsets = [0, 32], sizes = [4, 32], strides = [1, 1]} : vector<4x128xf32> to vector<4x32xf32>
    %163 = vector.extract_strided_slice %160 {offsets = [0, 64], sizes = [4, 32], strides = [1, 1]} : vector<4x128xf32> to vector<4x32xf32>
    %164 = vector.extract_strided_slice %160 {offsets = [0, 96], sizes = [4, 32], strides = [1, 1]} : vector<4x128xf32> to vector<4x32xf32>
    %165 = arith.mulf %162, %117 : vector<4x32xf32>
    %166 = arith.mulf %161, %163 : vector<4x32xf32>
    %167 = arith.addf %165, %166 : vector<4x32xf32>
    %168 = math.tanh %167 : vector<4x32xf32>
    %169 = arith.mulf %164, %168 : vector<4x32xf32>
    %170 = vector.shape_cast %122 : vector<4x1xi1> to vector<4x1xi1>
    %171 = vector.broadcast %170 : vector<4x1xi1> to vector<4x32xi1>
    %172 = arith.select %171, %167, %117 : vector<4x32xi1>, vector<4x32xf32>
    %173 = vector.shape_cast %122 : vector<4x1xi1> to vector<4x1xi1>
    %174 = vector.broadcast %173 : vector<4x1xi1> to vector<4x32xi1>
    %175 = arith.select %174, %169, %120 : vector<4x32xi1>, vector<4x32xf32>
    %c3_i32 = arith.constant 3 : i32
    %176 = vector.broadcast %c3_i32 : i32 to vector<4x1xi32>
    %177 = arith.cmpi sgt, %0, %176 : vector<4x1xi32>
    %178 = arith.index_cast %c3_i32 : i32 to index
    %c0_25 = arith.constant 0 : index
    %c0_26 = arith.constant 0 : index
    %179 = vector.load %arg1[%178, %c0_25, %c0_26] : memref<10x4x128xf32, #tpu.memory_space<vmem>>, vector<1x4x128xf32>
    %180 = vector.shape_cast %179 : vector<1x4x128xf32> to vector<4x128xf32>
    %cst_27 = arith.constant dense<0.000000e+00> : vector<4x128xf32>
    %181 = tpu.matmul %149, %1, %cst_27 {dimension_numbers = #tpu.dot_dimension_numbers<[1], [0], [0], [1], [0, 0, 1, 1], [], []>} : vector<4x32xf32>, vector<32x128xf32>, vector<4x128xf32> -> vector<4x128xf32>
    %182 = arith.addf %180, %181 : vector<4x128xf32>
    %183 = math.tanh %182 : vector<4x128xf32>
    %184 = arith.negf %182 : vector<4x128xf32>
    %185 = math.exp %184 : vector<4x128xf32>
    %cst_28 = arith.constant 1.000000e+00 : f32
    %186 = vector.broadcast %cst_28 : f32 to vector<4x128xf32>
    %187 = arith.addf %186, %185 : vector<4x128xf32>
    %188 = arith.divf %186, %187 : vector<4x128xf32>
    %189 = arith.select %9, %183, %188 : vector<4x128xi1>, vector<4x128xf32>
    %190 = vector.extract_strided_slice %189 {offsets = [0, 0], sizes = [4, 32], strides = [1, 1]} : vector<4x128xf32> to vector<4x32xf32>
    %191 = vector.extract_strided_slice %189 {offsets = [0, 32], sizes = [4, 32], strides = [1, 1]} : vector<4x128xf32> to vector<4x32xf32>
    %192 = vector.extract_strided_slice %189 {offsets = [0, 64], sizes = [4, 32], strides = [1, 1]} : vector<4x128xf32> to vector<4x32xf32>
    %193 = vector.extract_strided_slice %189 {offsets = [0, 96], sizes = [4, 32], strides = [1, 1]} : vector<4x128xf32> to vector<4x32xf32>
    %194 = arith.mulf %191, %146 : vector<4x32xf32>
    %195 = arith.mulf %190, %192 : vector<4x32xf32>
    %196 = arith.addf %194, %195 : vector<4x32xf32>
    %197 = math.tanh %196 : vector<4x32xf32>
    %198 = arith.mulf %193, %197 : vector<4x32xf32>
    %199 = vector.shape_cast %177 : vector<4x1xi1> to vector<4x1xi1>
    %200 = vector.broadcast %199 : vector<4x1xi1> to vector<4x32xi1>
    %201 = arith.select %200, %196, %146 : vector<4x32xi1>, vector<4x32xf32>
    %202 = vector.shape_cast %177 : vector<4x1xi1> to vector<4x1xi1>
    %203 = vector.broadcast %202 : vector<4x1xi1> to vector<4x32xi1>
    %204 = arith.select %203, %198, %149 : vector<4x32xi1>, vector<4x32xf32>
    %205 = tpu.concatenate %204, %175 in 1 : vector<4x32xf32>, vector<4x32xf32> -> vector<4x64xf32>
    %cst_29 = arith.constant dense<0.000000e+00> : vector<4x128xf32>
    %206 = tpu.matmul %205, %2, %cst_29 {dimension_numbers = #tpu.dot_dimension_numbers<[1], [0], [0], [1], [0, 0, 1, 1], [], []>} : vector<4x64xf32>, vector<64x128xf32>, vector<4x128xf32> -> vector<4x128xf32>
    %207 = vector.broadcast %3 : vector<1x128xf32> to vector<4x128xf32>
    %208 = arith.addf %206, %207 : vector<4x128xf32>
    %209 = math.tanh %208 : vector<4x128xf32>
    %210 = arith.negf %208 : vector<4x128xf32>
    %211 = math.exp %210 : vector<4x128xf32>
    %cst_30 = arith.constant 1.000000e+00 : f32
    %212 = vector.broadcast %cst_30 : f32 to vector<4x128xf32>
    %213 = arith.addf %212, %211 : vector<4x128xf32>
    %214 = arith.divf %212, %213 : vector<4x128xf32>
    %215 = arith.select %9, %209, %214 : vector<4x128xi1>, vector<4x128xf32>
    %216 = vector.extract_strided_slice %215 {offsets = [0, 0], sizes = [4, 32], strides = [1, 1]} : vector<4x128xf32> to vector<4x32xf32>
    %217 = vector.extract_strided_slice %215 {offsets = [0, 32], sizes = [4, 32], strides = [1, 1]} : vector<4x128xf32> to vector<4x32xf32>
    %218 = vector.extract_strided_slice %215 {offsets = [0, 64], sizes = [4, 32], strides = [1, 1]} : vector<4x128xf32> to vector<4x32xf32>
    %219 = vector.extract_strided_slice %215 {offsets = [0, 96], sizes = [4, 32], strides = [1, 1]} : vector<4x128xf32> to vector<4x32xf32>
    %220 = arith.mulf %217, %172 : vector<4x32xf32>
    %221 = arith.mulf %216, %218 : vector<4x32xf32>
    %222 = arith.addf %220, %221 : vector<4x32xf32>
    %223 = math.tanh %222 : vector<4x32xf32>
    %224 = arith.mulf %219, %223 : vector<4x32xf32>
    %225 = vector.shape_cast %177 : vector<4x1xi1> to vector<4x1xi1>
    %226 = vector.broadcast %225 : vector<4x1xi1> to vector<4x32xi1>
    %227 = arith.select %226, %222, %172 : vector<4x32xi1>, vector<4x32xf32>
    %228 = vector.shape_cast %177 : vector<4x1xi1> to vector<4x1xi1>
    %229 = vector.broadcast %228 : vector<4x1xi1> to vector<4x32xi1>
    %230 = arith.select %229, %224, %175 : vector<4x32xi1>, vector<4x32xf32>
    %c4_i32 = arith.constant 4 : i32
    %231 = vector.broadcast %c4_i32 : i32 to vector<4x1xi32>
    %232 = arith.cmpi sgt, %0, %231 : vector<4x1xi32>
    %233 = arith.index_cast %c4_i32 : i32 to index
    %c0_31 = arith.constant 0 : index
    %c0_32 = arith.constant 0 : index
    %234 = vector.load %arg1[%233, %c0_31, %c0_32] : memref<10x4x128xf32, #tpu.memory_space<vmem>>, vector<1x4x128xf32>
    %235 = vector.shape_cast %234 : vector<1x4x128xf32> to vector<4x128xf32>
    %cst_33 = arith.constant dense<0.000000e+00> : vector<4x128xf32>
    %236 = tpu.matmul %204, %1, %cst_33 {dimension_numbers = #tpu.dot_dimension_numbers<[1], [0], [0], [1], [0, 0, 1, 1], [], []>} : vector<4x32xf32>, vector<32x128xf32>, vector<4x128xf32> -> vector<4x128xf32>
    %237 = arith.addf %235, %236 : vector<4x128xf32>
    %238 = math.tanh %237 : vector<4x128xf32>
    %239 = arith.negf %237 : vector<4x128xf32>
    %240 = math.exp %239 : vector<4x128xf32>
    %cst_34 = arith.constant 1.000000e+00 : f32
    %241 = vector.broadcast %cst_34 : f32 to vector<4x128xf32>
    %242 = arith.addf %241, %240 : vector<4x128xf32>
    %243 = arith.divf %241, %242 : vector<4x128xf32>
    %244 = arith.select %9, %238, %243 : vector<4x128xi1>, vector<4x128xf32>
    %245 = vector.extract_strided_slice %244 {offsets = [0, 0], sizes = [4, 32], strides = [1, 1]} : vector<4x128xf32> to vector<4x32xf32>
    %246 = vector.extract_strided_slice %244 {offsets = [0, 32], sizes = [4, 32], strides = [1, 1]} : vector<4x128xf32> to vector<4x32xf32>
    %247 = vector.extract_strided_slice %244 {offsets = [0, 64], sizes = [4, 32], strides = [1, 1]} : vector<4x128xf32> to vector<4x32xf32>
    %248 = vector.extract_strided_slice %244 {offsets = [0, 96], sizes = [4, 32], strides = [1, 1]} : vector<4x128xf32> to vector<4x32xf32>
    %249 = arith.mulf %246, %201 : vector<4x32xf32>
    %250 = arith.mulf %245, %247 : vector<4x32xf32>
    %251 = arith.addf %249, %250 : vector<4x32xf32>
    %252 = math.tanh %251 : vector<4x32xf32>
    %253 = arith.mulf %248, %252 : vector<4x32xf32>
    %254 = vector.shape_cast %232 : vector<4x1xi1> to vector<4x1xi1>
    %255 = vector.broadcast %254 : vector<4x1xi1> to vector<4x32xi1>
    %256 = arith.select %255, %251, %201 : vector<4x32xi1>, vector<4x32xf32>
    %257 = vector.shape_cast %232 : vector<4x1xi1> to vector<4x1xi1>
    %258 = vector.broadcast %257 : vector<4x1xi1> to vector<4x32xi1>
    %259 = arith.select %258, %253, %204 : vector<4x32xi1>, vector<4x32xf32>
    %260 = tpu.concatenate %259, %230 in 1 : vector<4x32xf32>, vector<4x32xf32> -> vector<4x64xf32>
    %cst_35 = arith.constant dense<0.000000e+00> : vector<4x128xf32>
    %261 = tpu.matmul %260, %2, %cst_35 {dimension_numbers = #tpu.dot_dimension_numbers<[1], [0], [0], [1], [0, 0, 1, 1], [], []>} : vector<4x64xf32>, vector<64x128xf32>, vector<4x128xf32> -> vector<4x128xf32>
    %262 = vector.broadcast %3 : vector<1x128xf32> to vector<4x128xf32>
    %263 = arith.addf %261, %262 : vector<4x128xf32>
    %264 = math.tanh %263 : vector<4x128xf32>
    %265 = arith.negf %263 : vector<4x128xf32>
    %266 = math.exp %265 : vector<4x128xf32>
    %cst_36 = arith.constant 1.000000e+00 : f32
    %267 = vector.broadcast %cst_36 : f32 to vector<4x128xf32>
    %268 = arith.addf %267, %266 : vector<4x128xf32>
    %269 = arith.divf %267, %268 : vector<4x128xf32>
    %270 = arith.select %9, %264, %269 : vector<4x128xi1>, vector<4x128xf32>
    %271 = vector.extract_strided_slice %270 {offsets = [0, 0], sizes = [4, 32], strides = [1, 1]} : vector<4x128xf32> to vector<4x32xf32>
    %272 = vector.extract_strided_slice %270 {offsets = [0, 32], sizes = [4, 32], strides = [1, 1]} : vector<4x128xf32> to vector<4x32xf32>
    %273 = vector.extract_strided_slice %270 {offsets = [0, 64], sizes = [4, 32], strides = [1, 1]} : vector<4x128xf32> to vector<4x32xf32>
    %274 = vector.extract_strided_slice %270 {offsets = [0, 96], sizes = [4, 32], strides = [1, 1]} : vector<4x128xf32> to vector<4x32xf32>
    %275 = arith.mulf %272, %227 : vector<4x32xf32>
    %276 = arith.mulf %271, %273 : vector<4x32xf32>
    %277 = arith.addf %275, %276 : vector<4x32xf32>
    %278 = math.tanh %277 : vector<4x32xf32>
    %279 = arith.mulf %274, %278 : vector<4x32xf32>
    %280 = vector.shape_cast %232 : vector<4x1xi1> to vector<4x1xi1>
    %281 = vector.broadcast %280 : vector<4x1xi1> to vector<4x32xi1>
    %282 = arith.select %281, %277, %227 : vector<4x32xi1>, vector<4x32xf32>
    %283 = vector.shape_cast %232 : vector<4x1xi1> to vector<4x1xi1>
    %284 = vector.broadcast %283 : vector<4x1xi1> to vector<4x32xi1>
    %285 = arith.select %284, %279, %230 : vector<4x32xi1>, vector<4x32xf32>
    %c5_i32 = arith.constant 5 : i32
    %286 = vector.broadcast %c5_i32 : i32 to vector<4x1xi32>
    %287 = arith.cmpi sgt, %0, %286 : vector<4x1xi32>
    %288 = arith.index_cast %c5_i32 : i32 to index
    %c0_37 = arith.constant 0 : index
    %c0_38 = arith.constant 0 : index
    %289 = vector.load %arg1[%288, %c0_37, %c0_38] : memref<10x4x128xf32, #tpu.memory_space<vmem>>, vector<1x4x128xf32>
    %290 = vector.shape_cast %289 : vector<1x4x128xf32> to vector<4x128xf32>
    %cst_39 = arith.constant dense<0.000000e+00> : vector<4x128xf32>
    %291 = tpu.matmul %259, %1, %cst_39 {dimension_numbers = #tpu.dot_dimension_numbers<[1], [0], [0], [1], [0, 0, 1, 1], [], []>} : vector<4x32xf32>, vector<32x128xf32>, vector<4x128xf32> -> vector<4x128xf32>
    %292 = arith.addf %290, %291 : vector<4x128xf32>
    %293 = math.tanh %292 : vector<4x128xf32>
    %294 = arith.negf %292 : vector<4x128xf32>
    %295 = math.exp %294 : vector<4x128xf32>
    %cst_40 = arith.constant 1.000000e+00 : f32
    %296 = vector.broadcast %cst_40 : f32 to vector<4x128xf32>
    %297 = arith.addf %296, %295 : vector<4x128xf32>
    %298 = arith.divf %296, %297 : vector<4x128xf32>
    %299 = arith.select %9, %293, %298 : vector<4x128xi1>, vector<4x128xf32>
    %300 = vector.extract_strided_slice %299 {offsets = [0, 0], sizes = [4, 32], strides = [1, 1]} : vector<4x128xf32> to vector<4x32xf32>
    %301 = vector.extract_strided_slice %299 {offsets = [0, 32], sizes = [4, 32], strides = [1, 1]} : vector<4x128xf32> to vector<4x32xf32>
    %302 = vector.extract_strided_slice %299 {offsets = [0, 64], sizes = [4, 32], strides = [1, 1]} : vector<4x128xf32> to vector<4x32xf32>
    %303 = vector.extract_strided_slice %299 {offsets = [0, 96], sizes = [4, 32], strides = [1, 1]} : vector<4x128xf32> to vector<4x32xf32>
    %304 = arith.mulf %301, %256 : vector<4x32xf32>
    %305 = arith.mulf %300, %302 : vector<4x32xf32>
    %306 = arith.addf %304, %305 : vector<4x32xf32>
    %307 = math.tanh %306 : vector<4x32xf32>
    %308 = arith.mulf %303, %307 : vector<4x32xf32>
    %309 = vector.shape_cast %287 : vector<4x1xi1> to vector<4x1xi1>
    %310 = vector.broadcast %309 : vector<4x1xi1> to vector<4x32xi1>
    %311 = arith.select %310, %306, %256 : vector<4x32xi1>, vector<4x32xf32>
    %312 = vector.shape_cast %287 : vector<4x1xi1> to vector<4x1xi1>
    %313 = vector.broadcast %312 : vector<4x1xi1> to vector<4x32xi1>
    %314 = arith.select %313, %308, %259 : vector<4x32xi1>, vector<4x32xf32>
    %315 = tpu.concatenate %314, %285 in 1 : vector<4x32xf32>, vector<4x32xf32> -> vector<4x64xf32>
    %cst_41 = arith.constant dense<0.000000e+00> : vector<4x128xf32>
    %316 = tpu.matmul %315, %2, %cst_41 {dimension_numbers = #tpu.dot_dimension_numbers<[1], [0], [0], [1], [0, 0, 1, 1], [], []>} : vector<4x64xf32>, vector<64x128xf32>, vector<4x128xf32> -> vector<4x128xf32>
    %317 = vector.broadcast %3 : vector<1x128xf32> to vector<4x128xf32>
    %318 = arith.addf %316, %317 : vector<4x128xf32>
    %319 = math.tanh %318 : vector<4x128xf32>
    %320 = arith.negf %318 : vector<4x128xf32>
    %321 = math.exp %320 : vector<4x128xf32>
    %cst_42 = arith.constant 1.000000e+00 : f32
    %322 = vector.broadcast %cst_42 : f32 to vector<4x128xf32>
    %323 = arith.addf %322, %321 : vector<4x128xf32>
    %324 = arith.divf %322, %323 : vector<4x128xf32>
    %325 = arith.select %9, %319, %324 : vector<4x128xi1>, vector<4x128xf32>
    %326 = vector.extract_strided_slice %325 {offsets = [0, 0], sizes = [4, 32], strides = [1, 1]} : vector<4x128xf32> to vector<4x32xf32>
    %327 = vector.extract_strided_slice %325 {offsets = [0, 32], sizes = [4, 32], strides = [1, 1]} : vector<4x128xf32> to vector<4x32xf32>
    %328 = vector.extract_strided_slice %325 {offsets = [0, 64], sizes = [4, 32], strides = [1, 1]} : vector<4x128xf32> to vector<4x32xf32>
    %329 = vector.extract_strided_slice %325 {offsets = [0, 96], sizes = [4, 32], strides = [1, 1]} : vector<4x128xf32> to vector<4x32xf32>
    %330 = arith.mulf %327, %282 : vector<4x32xf32>
    %331 = arith.mulf %326, %328 : vector<4x32xf32>
    %332 = arith.addf %330, %331 : vector<4x32xf32>
    %333 = math.tanh %332 : vector<4x32xf32>
    %334 = arith.mulf %329, %333 : vector<4x32xf32>
    %335 = vector.shape_cast %287 : vector<4x1xi1> to vector<4x1xi1>
    %336 = vector.broadcast %335 : vector<4x1xi1> to vector<4x32xi1>
    %337 = arith.select %336, %332, %282 : vector<4x32xi1>, vector<4x32xf32>
    %338 = vector.shape_cast %287 : vector<4x1xi1> to vector<4x1xi1>
    %339 = vector.broadcast %338 : vector<4x1xi1> to vector<4x32xi1>
    %340 = arith.select %339, %334, %285 : vector<4x32xi1>, vector<4x32xf32>
    %c6_i32 = arith.constant 6 : i32
    %341 = vector.broadcast %c6_i32 : i32 to vector<4x1xi32>
    %342 = arith.cmpi sgt, %0, %341 : vector<4x1xi32>
    %343 = arith.index_cast %c6_i32 : i32 to index
    %c0_43 = arith.constant 0 : index
    %c0_44 = arith.constant 0 : index
    %344 = vector.load %arg1[%343, %c0_43, %c0_44] : memref<10x4x128xf32, #tpu.memory_space<vmem>>, vector<1x4x128xf32>
    %345 = vector.shape_cast %344 : vector<1x4x128xf32> to vector<4x128xf32>
    %cst_45 = arith.constant dense<0.000000e+00> : vector<4x128xf32>
    %346 = tpu.matmul %314, %1, %cst_45 {dimension_numbers = #tpu.dot_dimension_numbers<[1], [0], [0], [1], [0, 0, 1, 1], [], []>} : vector<4x32xf32>, vector<32x128xf32>, vector<4x128xf32> -> vector<4x128xf32>
    %347 = arith.addf %345, %346 : vector<4x128xf32>
    %348 = math.tanh %347 : vector<4x128xf32>
    %349 = arith.negf %347 : vector<4x128xf32>
    %350 = math.exp %349 : vector<4x128xf32>
    %cst_46 = arith.constant 1.000000e+00 : f32
    %351 = vector.broadcast %cst_46 : f32 to vector<4x128xf32>
    %352 = arith.addf %351, %350 : vector<4x128xf32>
    %353 = arith.divf %351, %352 : vector<4x128xf32>
    %354 = arith.select %9, %348, %353 : vector<4x128xi1>, vector<4x128xf32>
    %355 = vector.extract_strided_slice %354 {offsets = [0, 0], sizes = [4, 32], strides = [1, 1]} : vector<4x128xf32> to vector<4x32xf32>
    %356 = vector.extract_strided_slice %354 {offsets = [0, 32], sizes = [4, 32], strides = [1, 1]} : vector<4x128xf32> to vector<4x32xf32>
    %357 = vector.extract_strided_slice %354 {offsets = [0, 64], sizes = [4, 32], strides = [1, 1]} : vector<4x128xf32> to vector<4x32xf32>
    %358 = vector.extract_strided_slice %354 {offsets = [0, 96], sizes = [4, 32], strides = [1, 1]} : vector<4x128xf32> to vector<4x32xf32>
    %359 = arith.mulf %356, %311 : vector<4x32xf32>
    %360 = arith.mulf %355, %357 : vector<4x32xf32>
    %361 = arith.addf %359, %360 : vector<4x32xf32>
    %362 = math.tanh %361 : vector<4x32xf32>
    %363 = arith.mulf %358, %362 : vector<4x32xf32>
    %364 = vector.shape_cast %342 : vector<4x1xi1> to vector<4x1xi1>
    %365 = vector.broadcast %364 : vector<4x1xi1> to vector<4x32xi1>
    %366 = arith.select %365, %361, %311 : vector<4x32xi1>, vector<4x32xf32>
    %367 = vector.shape_cast %342 : vector<4x1xi1> to vector<4x1xi1>
    %368 = vector.broadcast %367 : vector<4x1xi1> to vector<4x32xi1>
    %369 = arith.select %368, %363, %314 : vector<4x32xi1>, vector<4x32xf32>
    %370 = tpu.concatenate %369, %340 in 1 : vector<4x32xf32>, vector<4x32xf32> -> vector<4x64xf32>
    %cst_47 = arith.constant dense<0.000000e+00> : vector<4x128xf32>
    %371 = tpu.matmul %370, %2, %cst_47 {dimension_numbers = #tpu.dot_dimension_numbers<[1], [0], [0], [1], [0, 0, 1, 1], [], []>} : vector<4x64xf32>, vector<64x128xf32>, vector<4x128xf32> -> vector<4x128xf32>
    %372 = vector.broadcast %3 : vector<1x128xf32> to vector<4x128xf32>
    %373 = arith.addf %371, %372 : vector<4x128xf32>
    %374 = math.tanh %373 : vector<4x128xf32>
    %375 = arith.negf %373 : vector<4x128xf32>
    %376 = math.exp %375 : vector<4x128xf32>
    %cst_48 = arith.constant 1.000000e+00 : f32
    %377 = vector.broadcast %cst_48 : f32 to vector<4x128xf32>
    %378 = arith.addf %377, %376 : vector<4x128xf32>
    %379 = arith.divf %377, %378 : vector<4x128xf32>
    %380 = arith.select %9, %374, %379 : vector<4x128xi1>, vector<4x128xf32>
    %381 = vector.extract_strided_slice %380 {offsets = [0, 0], sizes = [4, 32], strides = [1, 1]} : vector<4x128xf32> to vector<4x32xf32>
    %382 = vector.extract_strided_slice %380 {offsets = [0, 32], sizes = [4, 32], strides = [1, 1]} : vector<4x128xf32> to vector<4x32xf32>
    %383 = vector.extract_strided_slice %380 {offsets = [0, 64], sizes = [4, 32], strides = [1, 1]} : vector<4x128xf32> to vector<4x32xf32>
    %384 = vector.extract_strided_slice %380 {offsets = [0, 96], sizes = [4, 32], strides = [1, 1]} : vector<4x128xf32> to vector<4x32xf32>
    %385 = arith.mulf %382, %337 : vector<4x32xf32>
    %386 = arith.mulf %381, %383 : vector<4x32xf32>
    %387 = arith.addf %385, %386 : vector<4x32xf32>
    %388 = math.tanh %387 : vector<4x32xf32>
    %389 = arith.mulf %384, %388 : vector<4x32xf32>
    %390 = vector.shape_cast %342 : vector<4x1xi1> to vector<4x1xi1>
    %391 = vector.broadcast %390 : vector<4x1xi1> to vector<4x32xi1>
    %392 = arith.select %391, %387, %337 : vector<4x32xi1>, vector<4x32xf32>
    %393 = vector.shape_cast %342 : vector<4x1xi1> to vector<4x1xi1>
    %394 = vector.broadcast %393 : vector<4x1xi1> to vector<4x32xi1>
    %395 = arith.select %394, %389, %340 : vector<4x32xi1>, vector<4x32xf32>
    %c7_i32 = arith.constant 7 : i32
    %396 = vector.broadcast %c7_i32 : i32 to vector<4x1xi32>
    %397 = arith.cmpi sgt, %0, %396 : vector<4x1xi32>
    %398 = arith.index_cast %c7_i32 : i32 to index
    %c0_49 = arith.constant 0 : index
    %c0_50 = arith.constant 0 : index
    %399 = vector.load %arg1[%398, %c0_49, %c0_50] : memref<10x4x128xf32, #tpu.memory_space<vmem>>, vector<1x4x128xf32>
    %400 = vector.shape_cast %399 : vector<1x4x128xf32> to vector<4x128xf32>
    %cst_51 = arith.constant dense<0.000000e+00> : vector<4x128xf32>
    %401 = tpu.matmul %369, %1, %cst_51 {dimension_numbers = #tpu.dot_dimension_numbers<[1], [0], [0], [1], [0, 0, 1, 1], [], []>} : vector<4x32xf32>, vector<32x128xf32>, vector<4x128xf32> -> vector<4x128xf32>
    %402 = arith.addf %400, %401 : vector<4x128xf32>
    %403 = math.tanh %402 : vector<4x128xf32>
    %404 = arith.negf %402 : vector<4x128xf32>
    %405 = math.exp %404 : vector<4x128xf32>
    %cst_52 = arith.constant 1.000000e+00 : f32
    %406 = vector.broadcast %cst_52 : f32 to vector<4x128xf32>
    %407 = arith.addf %406, %405 : vector<4x128xf32>
    %408 = arith.divf %406, %407 : vector<4x128xf32>
    %409 = arith.select %9, %403, %408 : vector<4x128xi1>, vector<4x128xf32>
    %410 = vector.extract_strided_slice %409 {offsets = [0, 0], sizes = [4, 32], strides = [1, 1]} : vector<4x128xf32> to vector<4x32xf32>
    %411 = vector.extract_strided_slice %409 {offsets = [0, 32], sizes = [4, 32], strides = [1, 1]} : vector<4x128xf32> to vector<4x32xf32>
    %412 = vector.extract_strided_slice %409 {offsets = [0, 64], sizes = [4, 32], strides = [1, 1]} : vector<4x128xf32> to vector<4x32xf32>
    %413 = vector.extract_strided_slice %409 {offsets = [0, 96], sizes = [4, 32], strides = [1, 1]} : vector<4x128xf32> to vector<4x32xf32>
    %414 = arith.mulf %411, %366 : vector<4x32xf32>
    %415 = arith.mulf %410, %412 : vector<4x32xf32>
    %416 = arith.addf %414, %415 : vector<4x32xf32>
    %417 = math.tanh %416 : vector<4x32xf32>
    %418 = arith.mulf %413, %417 : vector<4x32xf32>
    %419 = vector.shape_cast %397 : vector<4x1xi1> to vector<4x1xi1>
    %420 = vector.broadcast %419 : vector<4x1xi1> to vector<4x32xi1>
    %421 = arith.select %420, %416, %366 : vector<4x32xi1>, vector<4x32xf32>
    %422 = vector.shape_cast %397 : vector<4x1xi1> to vector<4x1xi1>
    %423 = vector.broadcast %422 : vector<4x1xi1> to vector<4x32xi1>
    %424 = arith.select %423, %418, %369 : vector<4x32xi1>, vector<4x32xf32>
    %425 = tpu.concatenate %424, %395 in 1 : vector<4x32xf32>, vector<4x32xf32> -> vector<4x64xf32>
    %cst_53 = arith.constant dense<0.000000e+00> : vector<4x128xf32>
    %426 = tpu.matmul %425, %2, %cst_53 {dimension_numbers = #tpu.dot_dimension_numbers<[1], [0], [0], [1], [0, 0, 1, 1], [], []>} : vector<4x64xf32>, vector<64x128xf32>, vector<4x128xf32> -> vector<4x128xf32>
    %427 = vector.broadcast %3 : vector<1x128xf32> to vector<4x128xf32>
    %428 = arith.addf %426, %427 : vector<4x128xf32>
    %429 = math.tanh %428 : vector<4x128xf32>
    %430 = arith.negf %428 : vector<4x128xf32>
    %431 = math.exp %430 : vector<4x128xf32>
    %cst_54 = arith.constant 1.000000e+00 : f32
    %432 = vector.broadcast %cst_54 : f32 to vector<4x128xf32>
    %433 = arith.addf %432, %431 : vector<4x128xf32>
    %434 = arith.divf %432, %433 : vector<4x128xf32>
    %435 = arith.select %9, %429, %434 : vector<4x128xi1>, vector<4x128xf32>
    %436 = vector.extract_strided_slice %435 {offsets = [0, 0], sizes = [4, 32], strides = [1, 1]} : vector<4x128xf32> to vector<4x32xf32>
    %437 = vector.extract_strided_slice %435 {offsets = [0, 32], sizes = [4, 32], strides = [1, 1]} : vector<4x128xf32> to vector<4x32xf32>
    %438 = vector.extract_strided_slice %435 {offsets = [0, 64], sizes = [4, 32], strides = [1, 1]} : vector<4x128xf32> to vector<4x32xf32>
    %439 = vector.extract_strided_slice %435 {offsets = [0, 96], sizes = [4, 32], strides = [1, 1]} : vector<4x128xf32> to vector<4x32xf32>
    %440 = arith.mulf %437, %392 : vector<4x32xf32>
    %441 = arith.mulf %436, %438 : vector<4x32xf32>
    %442 = arith.addf %440, %441 : vector<4x32xf32>
    %443 = math.tanh %442 : vector<4x32xf32>
    %444 = arith.mulf %439, %443 : vector<4x32xf32>
    %445 = vector.shape_cast %397 : vector<4x1xi1> to vector<4x1xi1>
    %446 = vector.broadcast %445 : vector<4x1xi1> to vector<4x32xi1>
    %447 = arith.select %446, %442, %392 : vector<4x32xi1>, vector<4x32xf32>
    %448 = vector.shape_cast %397 : vector<4x1xi1> to vector<4x1xi1>
    %449 = vector.broadcast %448 : vector<4x1xi1> to vector<4x32xi1>
    %450 = arith.select %449, %444, %395 : vector<4x32xi1>, vector<4x32xf32>
    %c8_i32 = arith.constant 8 : i32
    %451 = vector.broadcast %c8_i32 : i32 to vector<4x1xi32>
    %452 = arith.cmpi sgt, %0, %451 : vector<4x1xi32>
    %453 = arith.index_cast %c8_i32 : i32 to index
    %c0_55 = arith.constant 0 : index
    %c0_56 = arith.constant 0 : index
    %454 = vector.load %arg1[%453, %c0_55, %c0_56] : memref<10x4x128xf32, #tpu.memory_space<vmem>>, vector<1x4x128xf32>
    %455 = vector.shape_cast %454 : vector<1x4x128xf32> to vector<4x128xf32>
    %cst_57 = arith.constant dense<0.000000e+00> : vector<4x128xf32>
    %456 = tpu.matmul %424, %1, %cst_57 {dimension_numbers = #tpu.dot_dimension_numbers<[1], [0], [0], [1], [0, 0, 1, 1], [], []>} : vector<4x32xf32>, vector<32x128xf32>, vector<4x128xf32> -> vector<4x128xf32>
    %457 = arith.addf %455, %456 : vector<4x128xf32>
    %458 = math.tanh %457 : vector<4x128xf32>
    %459 = arith.negf %457 : vector<4x128xf32>
    %460 = math.exp %459 : vector<4x128xf32>
    %cst_58 = arith.constant 1.000000e+00 : f32
    %461 = vector.broadcast %cst_58 : f32 to vector<4x128xf32>
    %462 = arith.addf %461, %460 : vector<4x128xf32>
    %463 = arith.divf %461, %462 : vector<4x128xf32>
    %464 = arith.select %9, %458, %463 : vector<4x128xi1>, vector<4x128xf32>
    %465 = vector.extract_strided_slice %464 {offsets = [0, 0], sizes = [4, 32], strides = [1, 1]} : vector<4x128xf32> to vector<4x32xf32>
    %466 = vector.extract_strided_slice %464 {offsets = [0, 32], sizes = [4, 32], strides = [1, 1]} : vector<4x128xf32> to vector<4x32xf32>
    %467 = vector.extract_strided_slice %464 {offsets = [0, 64], sizes = [4, 32], strides = [1, 1]} : vector<4x128xf32> to vector<4x32xf32>
    %468 = vector.extract_strided_slice %464 {offsets = [0, 96], sizes = [4, 32], strides = [1, 1]} : vector<4x128xf32> to vector<4x32xf32>
    %469 = arith.mulf %466, %421 : vector<4x32xf32>
    %470 = arith.mulf %465, %467 : vector<4x32xf32>
    %471 = arith.addf %469, %470 : vector<4x32xf32>
    %472 = math.tanh %471 : vector<4x32xf32>
    %473 = arith.mulf %468, %472 : vector<4x32xf32>
    %474 = vector.shape_cast %452 : vector<4x1xi1> to vector<4x1xi1>
    %475 = vector.broadcast %474 : vector<4x1xi1> to vector<4x32xi1>
    %476 = arith.select %475, %471, %421 : vector<4x32xi1>, vector<4x32xf32>
    %477 = vector.shape_cast %452 : vector<4x1xi1> to vector<4x1xi1>
    %478 = vector.broadcast %477 : vector<4x1xi1> to vector<4x32xi1>
    %479 = arith.select %478, %473, %424 : vector<4x32xi1>, vector<4x32xf32>
    %480 = tpu.concatenate %479, %450 in 1 : vector<4x32xf32>, vector<4x32xf32> -> vector<4x64xf32>
    %cst_59 = arith.constant dense<0.000000e+00> : vector<4x128xf32>
    %481 = tpu.matmul %480, %2, %cst_59 {dimension_numbers = #tpu.dot_dimension_numbers<[1], [0], [0], [1], [0, 0, 1, 1], [], []>} : vector<4x64xf32>, vector<64x128xf32>, vector<4x128xf32> -> vector<4x128xf32>
    %482 = vector.broadcast %3 : vector<1x128xf32> to vector<4x128xf32>
    %483 = arith.addf %481, %482 : vector<4x128xf32>
    %484 = math.tanh %483 : vector<4x128xf32>
    %485 = arith.negf %483 : vector<4x128xf32>
    %486 = math.exp %485 : vector<4x128xf32>
    %cst_60 = arith.constant 1.000000e+00 : f32
    %487 = vector.broadcast %cst_60 : f32 to vector<4x128xf32>
    %488 = arith.addf %487, %486 : vector<4x128xf32>
    %489 = arith.divf %487, %488 : vector<4x128xf32>
    %490 = arith.select %9, %484, %489 : vector<4x128xi1>, vector<4x128xf32>
    %491 = vector.extract_strided_slice %490 {offsets = [0, 0], sizes = [4, 32], strides = [1, 1]} : vector<4x128xf32> to vector<4x32xf32>
    %492 = vector.extract_strided_slice %490 {offsets = [0, 32], sizes = [4, 32], strides = [1, 1]} : vector<4x128xf32> to vector<4x32xf32>
    %493 = vector.extract_strided_slice %490 {offsets = [0, 64], sizes = [4, 32], strides = [1, 1]} : vector<4x128xf32> to vector<4x32xf32>
    %494 = vector.extract_strided_slice %490 {offsets = [0, 96], sizes = [4, 32], strides = [1, 1]} : vector<4x128xf32> to vector<4x32xf32>
    %495 = arith.mulf %492, %447 : vector<4x32xf32>
    %496 = arith.mulf %491, %493 : vector<4x32xf32>
    %497 = arith.addf %495, %496 : vector<4x32xf32>
    %498 = math.tanh %497 : vector<4x32xf32>
    %499 = arith.mulf %494, %498 : vector<4x32xf32>
    %500 = vector.shape_cast %452 : vector<4x1xi1> to vector<4x1xi1>
    %501 = vector.broadcast %500 : vector<4x1xi1> to vector<4x32xi1>
    %502 = arith.select %501, %497, %447 : vector<4x32xi1>, vector<4x32xf32>
    %503 = vector.shape_cast %452 : vector<4x1xi1> to vector<4x1xi1>
    %504 = vector.broadcast %503 : vector<4x1xi1> to vector<4x32xi1>
    %505 = arith.select %504, %499, %450 : vector<4x32xi1>, vector<4x32xf32>
    %c9_i32 = arith.constant 9 : i32
    %506 = vector.broadcast %c9_i32 : i32 to vector<4x1xi32>
    %507 = arith.cmpi sgt, %0, %506 : vector<4x1xi32>
    %508 = arith.index_cast %c9_i32 : i32 to index
    %c0_61 = arith.constant 0 : index
    %c0_62 = arith.constant 0 : index
    %509 = vector.load %arg1[%508, %c0_61, %c0_62] : memref<10x4x128xf32, #tpu.memory_space<vmem>>, vector<1x4x128xf32>
    %510 = vector.shape_cast %509 : vector<1x4x128xf32> to vector<4x128xf32>
    %cst_63 = arith.constant dense<0.000000e+00> : vector<4x128xf32>
    %511 = tpu.matmul %479, %1, %cst_63 {dimension_numbers = #tpu.dot_dimension_numbers<[1], [0], [0], [1], [0, 0, 1, 1], [], []>} : vector<4x32xf32>, vector<32x128xf32>, vector<4x128xf32> -> vector<4x128xf32>
    %512 = arith.addf %510, %511 : vector<4x128xf32>
    %513 = math.tanh %512 : vector<4x128xf32>
    %514 = arith.negf %512 : vector<4x128xf32>
    %515 = math.exp %514 : vector<4x128xf32>
    %cst_64 = arith.constant 1.000000e+00 : f32
    %516 = vector.broadcast %cst_64 : f32 to vector<4x128xf32>
    %517 = arith.addf %516, %515 : vector<4x128xf32>
    %518 = arith.divf %516, %517 : vector<4x128xf32>
    %519 = arith.select %9, %513, %518 : vector<4x128xi1>, vector<4x128xf32>
    %520 = vector.extract_strided_slice %519 {offsets = [0, 0], sizes = [4, 32], strides = [1, 1]} : vector<4x128xf32> to vector<4x32xf32>
    %521 = vector.extract_strided_slice %519 {offsets = [0, 32], sizes = [4, 32], strides = [1, 1]} : vector<4x128xf32> to vector<4x32xf32>
    %522 = vector.extract_strided_slice %519 {offsets = [0, 64], sizes = [4, 32], strides = [1, 1]} : vector<4x128xf32> to vector<4x32xf32>
    %523 = vector.extract_strided_slice %519 {offsets = [0, 96], sizes = [4, 32], strides = [1, 1]} : vector<4x128xf32> to vector<4x32xf32>
    %524 = arith.mulf %521, %476 : vector<4x32xf32>
    %525 = arith.mulf %520, %522 : vector<4x32xf32>
    %526 = arith.addf %524, %525 : vector<4x32xf32>
    %527 = math.tanh %526 : vector<4x32xf32>
    %528 = arith.mulf %523, %527 : vector<4x32xf32>
    %529 = vector.shape_cast %507 : vector<4x1xi1> to vector<4x1xi1>
    %530 = vector.broadcast %529 : vector<4x1xi1> to vector<4x32xi1>
    %531 = arith.select %530, %526, %476 : vector<4x32xi1>, vector<4x32xf32>
    %532 = vector.shape_cast %507 : vector<4x1xi1> to vector<4x1xi1>
    %533 = vector.broadcast %532 : vector<4x1xi1> to vector<4x32xi1>
    %534 = arith.select %533, %528, %479 : vector<4x32xi1>, vector<4x32xf32>
    %535 = tpu.concatenate %534, %505 in 1 : vector<4x32xf32>, vector<4x32xf32> -> vector<4x64xf32>
    %cst_65 = arith.constant dense<0.000000e+00> : vector<4x128xf32>
    %536 = tpu.matmul %535, %2, %cst_65 {dimension_numbers = #tpu.dot_dimension_numbers<[1], [0], [0], [1], [0, 0, 1, 1], [], []>} : vector<4x64xf32>, vector<64x128xf32>, vector<4x128xf32> -> vector<4x128xf32>
    %537 = vector.broadcast %3 : vector<1x128xf32> to vector<4x128xf32>
    %538 = arith.addf %536, %537 : vector<4x128xf32>
    %539 = math.tanh %538 : vector<4x128xf32>
    %540 = arith.negf %538 : vector<4x128xf32>
    %541 = math.exp %540 : vector<4x128xf32>
    %cst_66 = arith.constant 1.000000e+00 : f32
    %542 = vector.broadcast %cst_66 : f32 to vector<4x128xf32>
    %543 = arith.addf %542, %541 : vector<4x128xf32>
    %544 = arith.divf %542, %543 : vector<4x128xf32>
    %545 = arith.select %9, %539, %544 : vector<4x128xi1>, vector<4x128xf32>
    %546 = vector.extract_strided_slice %545 {offsets = [0, 0], sizes = [4, 32], strides = [1, 1]} : vector<4x128xf32> to vector<4x32xf32>
    %547 = vector.extract_strided_slice %545 {offsets = [0, 32], sizes = [4, 32], strides = [1, 1]} : vector<4x128xf32> to vector<4x32xf32>
    %548 = vector.extract_strided_slice %545 {offsets = [0, 64], sizes = [4, 32], strides = [1, 1]} : vector<4x128xf32> to vector<4x32xf32>
    %549 = vector.extract_strided_slice %545 {offsets = [0, 96], sizes = [4, 32], strides = [1, 1]} : vector<4x128xf32> to vector<4x32xf32>
    %550 = arith.mulf %547, %502 : vector<4x32xf32>
    %551 = arith.mulf %546, %548 : vector<4x32xf32>
    %552 = arith.addf %550, %551 : vector<4x32xf32>
    %553 = math.tanh %552 : vector<4x32xf32>
    %554 = arith.mulf %549, %553 : vector<4x32xf32>
    %555 = vector.shape_cast %507 : vector<4x1xi1> to vector<4x1xi1>
    %556 = vector.broadcast %555 : vector<4x1xi1> to vector<4x32xi1>
    %557 = arith.select %556, %552, %502 : vector<4x32xi1>, vector<4x32xf32>
    %558 = vector.shape_cast %507 : vector<4x1xi1> to vector<4x1xi1>
    %559 = vector.broadcast %558 : vector<4x1xi1> to vector<4x32xi1>
    %560 = arith.select %559, %554, %505 : vector<4x32xi1>, vector<4x32xf32>
    %c10_i32 = arith.constant 10 : i32
    %c0_67 = arith.constant 0 : index
    %c0_68 = arith.constant 0 : index
    %561 = vector.load %arg6[%c0_67, %c0_68] : memref<32x128xf32, #tpu.memory_space<vmem>>, vector<32x128xf32>
    %cst_69 = arith.constant dense<0.000000e+00> : vector<4x128xf32>
    %562 = tpu.matmul %560, %561, %cst_69 {dimension_numbers = #tpu.dot_dimension_numbers<[1], [0], [0], [1], [0, 0, 1, 1], [], []>} : vector<4x32xf32>, vector<32x128xf32>, vector<4x128xf32> -> vector<4x128xf32>
    %c0_70 = arith.constant 0 : index
    %c0_71 = arith.constant 0 : index
    %563 = vector.load %arg7[%c0_70, %c0_71] : memref<1x128xf32, #tpu.memory_space<vmem>>, vector<1x128xf32>
    %564 = vector.broadcast %563 : vector<1x128xf32> to vector<4x128xf32>
    %565 = arith.addf %562, %564 : vector<4x128xf32>
    %c0_72 = arith.constant 0 : index
    %c0_73 = arith.constant 0 : index
    %566 = vector.load %arg8[%c0_72, %c0_73] : memref<4x128xf32, #tpu.memory_space<vmem>>, vector<4x128xf32>
    tpu.vector_store %arg8[%c0_72, %c0_73], %565 {strides = array<i32>} : memref<4x128xf32, #tpu.memory_space<vmem>>, vector<4x128xf32>,
    return
  }
  func.func @transform_0(%arg0: i32) -> (i32, i32, i32) {
    %c0_i32 = arith.constant 0 : i32
    %c0_i32_0 = arith.constant 0 : i32
    %c0_i32_1 = arith.constant 0 : i32
    return %c0_i32, %arg0, %c0_i32_0 : i32, i32, i32
  }
  func.func @transform_1(%arg0: i32) -> (i32, i32) {
    %c0_i32 = arith.constant 0 : i32
    %c0_i32_0 = arith.constant 0 : i32
    return %arg0, %c0_i32 : i32, i32
  }
  func.func @transform_2(%arg0: i32) -> (i32, i32) {
    %c0_i32 = arith.constant 0 : i32
    %c0_i32_0 = arith.constant 0 : i32
    %c0_i32_1 = arith.constant 0 : i32
    return %c0_i32, %c0_i32_0 : i32, i32
  }
  func.func @transform_3(%arg0: i32) -> (i32, i32) {
    %c0_i32 = arith.constant 0 : i32
    %c0_i32_0 = arith.constant 0 : i32
    %c0_i32_1 = arith.constant 0 : i32
    return %c0_i32, %c0_i32_0 : i32, i32
  }
  func.func @transform_4(%arg0: i32) -> (i32, i32) {
    %c0_i32 = arith.constant 0 : i32
    %c0_i32_0 = arith.constant 0 : i32
    %c0_i32_1 = arith.constant 0 : i32
    return %c0_i32, %c0_i32_0 : i32, i32
  }
  func.func @transform_5(%arg0: i32) -> (i32, i32) {
    %c0_i32 = arith.constant 0 : i32
    %c0_i32_0 = arith.constant 0 : i32
    %c0_i32_1 = arith.constant 0 : i32
    return %c0_i32, %c0_i32_0 : i32, i32
  }
  func.func @transform_6(%arg0: i32) -> (i32, i32) {
    %c0_i32 = arith.constant 0 : i32
    %c0_i32_0 = arith.constant 0 : i32
    %c0_i32_1 = arith.constant 0 : i32
    return %c0_i32, %c0_i32_0 : i32, i32
  }
  func.func @transform_7(%arg0: i32) -> (i32, i32) {
    %c0_i32 = arith.constant 0 : i32
    %c0_i32_0 = arith.constant 0 : i32
    return %arg0, %c0_i32 : i32, i32
  }
}

</mosaic_0001>

<bundles_post_ra>
// kernel: tpu_custom_call.1
= control target key start
LH: loop header
LB: loop body
LE: loop exit
PB: predicated region body
PF: predicated region fallthrough
CT: control target
= control target key end

     0   :  { %12 = vsyncpa [#allocation3], 0  ;;  %s4172_s0 = inlined_call_operand.hbm [shape: f32[10,4,128], index: 0, kind: input, shape index: {}]   ;;  %s4173_s1 = inlined_call_operand.vmem [shape: s32[4,1], index: 1, kind: input, shape index: {}]   ;;  %s4174_s2 = inlined_call_operand.hbm [shape: f32[32,128], index: 2, kind: input, shape index: {}]   ;;  %s4175_s3 = inlined_call_operand.hbm [shape: f32[64,128], index: 3, kind: input, shape index: {}]   ;;  %s4176_s4 = inlined_call_operand.vmem [shape: f32[1,128], index: 4, kind: input, shape index: {}]   ;;  %s4177_s5 = inlined_call_operand.hbm [shape: f32[32,128], index: 5, kind: input, shape index: {}]   ;;  %s4178_s6 = inlined_call_operand.vmem [shape: f32[1,128], index: 6, kind: input, shape index: {}]   ;;  %s4179_s7 = inlined_call_operand.hbm [shape: f32[4,128], index: 7, kind: output, shape index: {}]  }
   0x1   :  { %13 = vsyncpa [#allocation6], 0 }
   0x2   :  { %14 = vsyncpa [#allocation9], 0 }
   0x3   :  { %15 = vsyncpa [#allocation4], 0  ;;  %s3357_s24 = smov [#allocation5]   ;;  %s3239_s28 = scalar_lea.hbm %s4174_s2, 512 }
   0x4   :  { %s35_s25 = sshll.u32 %s3357_s24, 4  ;;  %p3240_p0 = scmp.ne.s32.totalorder %s4174_s2, %s3239_s28  ;;  %s36_s25 = int_to_ptr.vmem [resolvable:$true] %s35_s25 }
   0x5   :  { %p3243_p1 = scmp.lt.u32.totalorder %s3239_s28, %s4174_s2 }
   0x7   :  { %p3245_p2 = pnand %p3243_p1, %p3240_p0 }
   0x9   :  { %3248 = shalt.err (!%p3245_p2)
}
   0xa   :  { %s3249_s10 = scalar_lea.vmem %s36_s25, 512  ;;  %p3254_p4 = scmp.lt.s32.totalorder %s36_s25, %s36_s25 }
   0xb   :  { %p3250_p3 = scmp.ne.s32.totalorder %s36_s25, %s3249_s10  ;;  %p3255_p5 = scmp.lt.s32.totalorder %s3249_s10, %s3249_s10 }
   0xd   :  { %p3256_p6 = por %p3255_p5, %p3254_p4 }
   0xf   :  { %p3257_p7 = pnand %p3256_p6, %p3250_p3 }
  0x11   :  { %3260 = shalt.err (!%p3257_p7)
}
  0x12   :  { %s3358_s11 = smov 128   ;;  %s3359_s12 = smov 8  }
  0x13   :  { %41 = dma.hbm_to_vmem [thread:$0]  %s4174_s2, 512, %s36_s25, [#allocation6], %s3358_s11, %s3358_s11, %s3359_s12  }
  0x14   :  { %s3360_s15 = smov [#allocation2]   ;;  %s3261_s19 = scalar_lea.hbm %s4172_s0, 640 }
  0x15   :  { %s21_s16 = sshll.u32 %s3360_s15, 4  ;;  %p3262_p8 = scmp.ne.s32.totalorder %s4172_s0, %s3261_s19  ;;  %s22_s16 = int_to_ptr.vmem [resolvable:$true] %s21_s16 }
  0x16   :  { %p3265_p9 = scmp.lt.u32.totalorder %s3261_s19, %s4172_s0 }
  0x18   :  { %p3267_p10 = pnand %p3265_p9, %p3262_p8 }
  0x1a   :  { %3270 = shalt.err (!%p3267_p10)
}
  0x1b   :  { %s3271_s24 = scalar_lea.vmem %s22_s16, 640  ;;  %p3276_p12 = scmp.lt.s32.totalorder %s22_s16, %s22_s16 }
  0x1c   :  { %p3272_p11 = scmp.ne.s32.totalorder %s22_s16, %s3271_s24  ;;  %p3277_p13 = scmp.lt.s32.totalorder %s3271_s24, %s3271_s24 }
  0x1e   :  { %p3278_p0 = por %p3277_p13, %p3276_p12 }
  0x20   :  { %p3279_p1 = pnand %p3278_p0, %p3272_p11 }
  0x22   :  { %3282 = shalt.err (!%p3279_p1)
}
  0x23   :  { %s3361_s2 = smov 64   ;;  %s3362_s25 = smov 4  }
  0x24   :  { %27 = dma.hbm_to_vmem [thread:$0]  %s4172_s0, 640, %s22_s16, [#allocation3], %s3361_s2, %s3361_s2, %s3362_s25  }
  0x25   :  { %s3363_s28 = smov [#allocation7]   ;;  %s3364_s30 = smov [#allocation8]  }
  0x26   :  { %s47_s29 = sshll.u32 %s3363_s28, 4  ;;  %s61_s8 = sshll.u32 %s3364_s30, 4  ;;  %s48_s29 = int_to_ptr.vmem [resolvable:$true] %s47_s29  ;;  %s3440_s8 = int_to_ptr.vmem [resolvable:$true] %s61_s8 }
  0x27   :  { %s3283_s13 = scalar_lea.hbm %s4175_s3, 1024 }
  0x28   :  { %p3284_p2 = scmp.ne.s32.totalorder %s4175_s3, %s3283_s13  ;;  %p3287_p3 = scmp.lt.u32.totalorder %s3283_s13, %s4175_s3 }
  0x2a   :  { %p3289_p4 = pnand %p3287_p3, %p3284_p2 }
  0x2c   :  { %3292 = shalt.err (!%p3289_p4)
}
  0x2d   :  { %s3293_s0 = scalar_lea.vmem %s48_s29, 1024  ;;  %p3298_p6 = scmp.lt.s32.totalorder %s48_s29, %s48_s29 }
  0x2e   :  { %p3294_p5 = scmp.ne.s32.totalorder %s48_s29, %s3293_s0  ;;  %p3299_p7 = scmp.lt.s32.totalorder %s3293_s0, %s3293_s0 }
  0x30   :  { %p3300_p8 = por %p3299_p7, %p3298_p6 }
  0x32   :  { %p3301_p9 = pnand %p3300_p8, %p3294_p5 }
  0x34   :  { %3304 = shalt.err (!%p3301_p9)
}
  0x35   :  { %53 = dma.hbm_to_vmem [thread:$0]  %s4175_s3, 1024, %s48_s29, [#allocation6], %s3358_s11, %s3358_s11, %s3359_s12  }
  0x36   :  { %s3305_s22 = scalar_lea.hbm %s4177_s5, 512 }
  0x37   :  { %p3306_p10 = scmp.ne.s32.totalorder %s4177_s5, %s3305_s22  ;;  %p3309_p11 = scmp.lt.u32.totalorder %s3305_s22, %s4177_s5 }
  0x39   :  { %p3311_p12 = pnand %p3309_p11, %p3306_p10 }
  0x3b   :  { %3314 = shalt.err (!%p3311_p12)
}
  0x3c   :  { %s3315_s27 = scalar_lea.vmem %s3440_s8, 512  ;;  %p3320_p0 = scmp.lt.s32.totalorder %s3440_s8, %s3440_s8 }
  0x3d   :  { %p3316_p13 = scmp.ne.s32.totalorder %s3440_s8, %s3315_s27  ;;  %p3321_p1 = scmp.lt.s32.totalorder %s3315_s27, %s3315_s27 }
  0x3f   :  { %p3322_p2 = por %p3321_p1, %p3320_p0 }
  0x41   :  { %p3323_p3 = pnand %p3322_p2, %p3316_p13 }
  0x43   :  { %3326 = shalt.err (!%p3323_p3)
}
  0x44   :  { %67 = dma.hbm_to_vmem [thread:$0]  %s4177_s5, 512, %s3440_s8, [#allocation9], %s3358_s11, %s3358_s11, %s3359_s12  }
  0x45   :  { %3349 = dma.done.wait [#allocation3], 640  }
  0x46   :  { %3350 = vsyncadd [#allocation3], 4294966656 }
  0x47   :  { %3351 = dma.done.wait [#allocation6], 1536  }
  0x48   :  { %3352 = vsyncadd [#allocation6], 4294965760 }
  0x49   :  { %3353 = dma.done.wait [#allocation9], 512  }
  0x4a   :  { %3354 = vsyncadd [#allocation9], 4294966784  ;;  %v3365_v0 = vmov 0.0|0.0   ;;  %vm3366_vm0 = vmmov 0   ;;  %v3367_v1 = vmov 0.0   ;;  %v83_v2 = vld [vmem:[#allocation5] sm:$0xff]  ;;  %v96_v17 = vlaneseq }
  0x4b   :  { %2875 = vmatprep.subr.bf16.mxu0 %v3365_v0  ;;  %2572 = vmatprep.mubr.msk.f32.mxu0 %vm3366_vm0, %v3367_v1  ;;  %v84_v3 = vld [vmem:[#allocation5 + $0x8] sm:$0xff]  ;;  %v85_v4 = vld [vmem:[#allocation5 + $0x10] sm:$0xff]  ;;  %v86_v6 = vld [vmem:[#allocation5 + $0x18] sm:$0xff]  ;;  %v3368_v9 = vmov 0   ;;  %s3369_s12 = smov 32   ;;  %vm103_vm6 = vcmask 261120  }
  0x4c   :  { %2881 = vmatprep.subr.bf16.mxu1 %v3365_v0  ;;  %2591 = vmatprep.mubr.msk.f32.mxu1 %vm3366_vm0, %v3367_v1  ;;  %v3483_v5 = vpack.c.bf16 %v84_v3, %v83_v2  ;;  %v3486_v7 = vpack.c.bf16 %v86_v6, %v85_v4  ;;  %v3501_v8 = vld [vmem:[%s4173_s1] sm:$0xf]  ;;  %v97_v19 = vand.u32 127, %v96_v17  ;;  %v87_v29 = vld [vmem:[#allocation7] sm:$0xff]  ;;  %v88_v30 = vld [vmem:[#allocation7 + $0x8] sm:$0xff]  ;;  %vm221_vm7 = vcmask 523264  }
  0x4d   :  { %3075 = vset.pattern.permute.xlu1 %v3368_v9  ;;  %vm101_vm1 = vcmp.gt.s32.totalorder %v3501_v8, 0  ;;  %3076 = vset.pattern.permute.xlu0 %v3368_v9  ;;  %v102_v11 = vld [vmem:[#allocation2] sm:$0xf]  ;;  %v89_v31 = vld [vmem:[#allocation7 + $0x10] sm:$0xff]  ;;  %v3518_v32 = vpack.c.bf16 %v88_v30, %v87_v29  ;;  %v91_v35 = vld [vmem:[#allocation7 + $0x20] sm:$0xff]  ;;  %vm322_vm8 = vcmp.gt.s32.totalorder %v3501_v8, 1 }
  0x4e   :  { %2877 = vmatpush3.bf16.msra.mxu0 %v3483_v5  ;;  %v203_v10 = vsel %vm101_vm1, 1, %v3368_v9  ;;  %vm98_vm2 = vcmp.ge.s32.totalorder %v97_v19, 64  ;;  %vm99_vm3 = vcmp.lt.s32.totalorder %v97_v19, 96  ;;  %v90_v33 = vld [vmem:[#allocation7 + $0x18] sm:$0xff]  ;;  %v92_v36 = vld [vmem:[#allocation7 + $0x28] sm:$0xff]  ;;  %v93_v38 = vld [vmem:[#allocation7 + $0x30] sm:$0xff] }
  0x4f   :  { %2878 = vmatprep.subr.bf16.mxu0 %v3365_v0  ;;  %205 = vperm.xlu1 %3075, %v203_v10   ;;  %vm3507_vm4 = vmand %vm98_vm2, %vm99_vm3  ;;  %v3521_v34 = vpack.c.bf16 %v90_v33, %v89_v31  ;;  %v3525_v37 = vpack.c.bf16 %v92_v36, %v91_v35  ;;  %v94_v39 = vld [vmem:[#allocation7 + $0x38] sm:$0xff]  ;;  %vm539_vm10 = vcmp.gt.s32.totalorder %v3501_v8, 2  ;;  %vm756_vm12 = vcmp.gt.s32.totalorder %v3501_v8, 3  ;;  %s3370_s14 = smov [#allocation10]  }
  0x50   :  { %2883 = vmatpush3.bf16.msra.mxu1 %v3518_v32  ;;  %v3530_v41 = vpack.c.bf16 %v94_v39, %v93_v38  ;;  %v324_v48 = vld [vmem:[#allocation2 + $0x4] sm:$0xf]  ;;  %v3566_v49 = vld [vmem:[%s4176_s4] ss:$0 sm:$0xff]  ;;  %v541_v38 = vld [vmem:[#allocation2 + $0x8] sm:$0xf] }
  0x51   :  { %2884 = vmatprep.subr.bf16.mxu1 %v3365_v0  ;;  %vm973_vm14 = vcmp.gt.s32.totalorder %v3501_v8, 4  ;;  %vm1190_vm1 = vcmp.gt.s32.totalorder %v3501_v8, 5  ;;  %vm1407_vm3 = vcmp.gt.s32.totalorder %v3501_v8, 6  ;;  %s2366_s15 = sshll.u32 %s3370_s14, 4  ;;  %s2367_s15 = int_to_ptr.vmem [resolvable:$true] %s2366_s15 }
  0x52   :  { %2880 = vmatpush3.bf16.msra.mxu0 %v3486_v7  ;;  %p3332_p5 = scmp.lt.s32.totalorder %s2367_s15, %s2367_s15 }
  0x53   :  { %2893 = vmatprep.subr.bf16.mxu0 %v3365_v0 }
  0x54   :  { %2886 = vmatpush3.bf16.msra.mxu1 %v3521_v34 }
  0x55   :  { %2573 = vmatmul.mubr.f32.vlgmr.msra.gmra.mrb[0].mxu0 %v3367_v1  ;;  %2887 = vmatprep.subr.bf16.mxu1 %v3365_v0 }
  0x56   :  { %2895 = vmatpush3.bf16.msra.mxu0 %v3483_v5  ;;  %2602 = vmatprep.mubr.msk.f32.mxu0 %vm3366_vm0, %v3367_v1 }
  0x57   :  { %2896 = vmatprep.subr.bf16.mxu0 %v3365_v0 }
  0x58   :  { %2889 = vmatpush3.bf16.msra.mxu1 %v3525_v37 }
  0x59   :  { %2890 = vmatprep.subr.bf16.mxu1 %v3365_v0 }
  0x5a   :  { %2898 = vmatpush3.bf16.msra.mxu0 %v3486_v7 }
  0x5b   :  { %2899 = vmatprep.subr.bf16.mxu0 %v3365_v0 }
  0x5c   :  { %2892 = vmatpush3.bf16.msra.mxu1 %v3530_v41 }
  0x5d   :  { %2911 = vmatprep.subr.bf16.mxu1 %v3365_v0 }
  0xce   :  { %v3535_v42 = vpop.permute.xlu1 %205 }
  0xcf   :  { %vm207_vm5 = vcmp.eq.s32.totalorder %v3535_v42, 1 }
 0x128   :  { %v173_v12 = vpop.f32.mrb[0].mxu0 }
 0x129   :  { %v177_v13 = vadd.f32 %v173_v12, %v102_v11  ;;  %v2574_v14 = vpop.f32.mrb[1].mxu0 }
 0x12a   :  { %v423_v14 = vsel %vm322_vm8, 1, %v3368_v9 }
 0x12b   :  { %v2377_v15 = vmul.f32 -1.442695, %v177_v13 }
 0x12d   :  { %3077 = vpow2.f32 %v2377_v15 }
 0x12e   :  { %3079 = vtanh.f32 %v177_v13 }
 0x137   :  { %v3078_v16 = vpop.eup %3077 }
 0x138   :  { %v182_v18 = vadd.f32 1.0, %v3078_v16  ;;  %v3080_v21 = vpop.eup %3079 }
 0x13a   :  { %3081 = vrcp.f32 %v182_v18 }
 0x144   :  { %v3082_v22 = vpop.eup %3081 }
 0x145   :  { %v185_v23 = vsel %vm3507_vm4, %v3080_v21, %v3082_v22 }
 0x146   :  { %188 = vrot.lane.b32.xlu0 %v185_v23, %s3361_s2  ;;  %v186_v26 = vmul.f32 0.0, %v185_v23 }
 0x1b8   :  { %v189_v24 = vpop.permute.xlu0 %188 }
 0x1b9   :  { %v191_v25 = vmul.f32 %v189_v24, %v185_v23 }
 0x1bb   :  { %193 = vrot.lane.b32.xlu0 %v191_v25, %s3369_s12 }
 0x22d   :  { %v194_v27 = vpop.permute.xlu0 %193 }
 0x22e   :  { %v3515_v28 = vadd.f32 %v194_v27, %v186_v26 }
 0x230   :  { %3083 = vtanh.f32 %v3515_v28  ;;  %v3582_v15 = vsel %vm207_vm5, %v3515_v28, 0.0 }
 0x23a   :  { %v3084_v40 = vpop.eup %3083 }
 0x23b   :  { %199 = vrot.lane.b32.xlu1 %v3084_v40, %s3361_s2 }
 0x2ad   :  { %v200_v43 = vpop.permute.xlu1 %199 }
 0x2ae   :  { %v202_v44 = vmul.f32 %v200_v43, %v185_v23 }
 0x2b0   :  { %v3540_v45 = vsel %vm207_vm5, %v202_v44, 0.0 }
 0x2b1   :  { %211 = vrot.lane.b32.xlu0 %v3540_v45, %s3369_s12 }
 0x323   :  { %v212_v46 = vpop.permute.xlu0 %211 }
 0x324   :  { %v214_v47 = vsel %vm103_vm6, %v212_v46, 0.0  ;;  %2603 = vmatmul.mubr.msk.f32.vlgmr.msra.gmra.mrb[2].mxu0 %vm103_vm6, %v212_v46 }
 0x325   :  { %2592 = vmatmul.mubr.msk.f32.vlgmr.msra.gmra.mrb[0].mxu1 %vm221_vm7, %v214_v47  ;;  %2901 = vmatpush3.bf16.msra.mxu0 %v3518_v32 }
 0x326   :  { %2902 = vmatprep.subr.bf16.mxu0 %v3365_v0  ;;  %2913 = vmatpush3.bf16.msra.mxu1 %v3483_v5 }
 0x327   :  { %2914 = vmatprep.subr.bf16.mxu1 %v3365_v0  ;;  %2632 = vmatprep.mubr.msk.f32.mxu1 %vm3366_vm0, %v3367_v1 }
 0x328   :  { %2621 = vmatprep.mubr.msk.f32.mxu0 %vm3366_vm0, %v3367_v1 }
 0x329   :  { %2904 = vmatpush3.bf16.msra.mxu0 %v3521_v34 }
 0x32a   :  { %2905 = vmatprep.subr.bf16.mxu0 %v3365_v0  ;;  %2916 = vmatpush3.bf16.msra.mxu1 %v3486_v7 }
 0x32b   :  { %2917 = vmatprep.subr.bf16.mxu1 %v3365_v0 }
 0x32d   :  { %2907 = vmatpush3.bf16.msra.mxu0 %v3525_v37 }
 0x32e   :  { %2908 = vmatprep.subr.bf16.mxu0 %v3365_v0 }
 0x331   :  { %2910 = vmatpush3.bf16.msra.mxu0 %v3530_v41 }
 0x332   :  { %2929 = vmatprep.subr.bf16.mxu0 %v3365_v0 }
 0x3f7   :  { %v393_v50 = vpop.f32.mrb[2].mxu0 }
 0x3f8   :  { %v397_v51 = vadd.f32 %v393_v50, %v324_v48  ;;  %v291_v52 = vpop.f32.mrb[0].mxu1  ;;  %v2604_v53 = vpop.f32.mrb[3].mxu0 }
 0x3f9   :  { %v292_v54 = vadd.f32 %v3566_v49, %v291_v52  ;;  %v2593_v55 = vpop.f32.mrb[1].mxu1 }
 0x3fa   :  { %v2382_v56 = vmul.f32 -1.442695, %v397_v51 }
 0x3fb   :  { %v2380_v57 = vmul.f32 -1.442695, %v292_v54 }
 0x3fc   :  { %3085 = vpow2.f32 %v2382_v56 }
 0x3fd   :  { %3087 = vpow2.f32 %v2380_v57 }
 0x3fe   :  { %3089 = vtanh.f32 %v397_v51 }
 0x3ff   :  { %3091 = vtanh.f32 %v292_v54 }
 0x406   :  { %v3086_v58 = vpop.eup %3085 }
 0x407   :  { %v3088_v59 = vpop.eup %3087  ;;  %v402_v60 = vadd.f32 1.0, %v3086_v58 }
 0x408   :  { %v299_v61 = vadd.f32 1.0, %v3088_v59  ;;  %v3090_v62 = vpop.eup %3089 }
 0x409   :  { %3093 = vrcp.f32 %v402_v60  ;;  %v3092_v63 = vpop.eup %3091 }
 0x40a   :  { %3095 = vrcp.f32 %v299_v61 }
 0x413   :  { %v3094_v2 = vpop.eup %3093 }
 0x414   :  { %v3096_v3 = vpop.eup %3095  ;;  %v405_v4 = vsel %vm3507_vm4, %v3090_v62, %v3094_v2  ;;  %v640_v2 = vsel %vm539_vm10, 1, %v3368_v9 }
 0x415   :  { %408 = vrot.lane.b32.xlu0 %v405_v4, %s3361_s2  ;;  %v302_v6 = vsel %vm3507_vm4, %v3092_v63, %v3096_v3  ;;  %v406_v16 = vmul.f32 %v405_v4, %v3582_v15 }
 0x416   :  { %305 = vrot.lane.b32.xlu1 %v302_v6, %s3361_s2  ;;  %v303_v18 = vmul.f32 0.0, %v302_v6 }
 0x487   :  { %v409_v10 = vpop.permute.xlu0 %408 }
 0x488   :  { %v411_v11 = vmul.f32 %v409_v10, %v405_v4  ;;  %v306_v12 = vpop.permute.xlu1 %305 }
 0x489   :  { %v308_v13 = vmul.f32 %v306_v12, %v302_v6 }
 0x48a   :  { %413 = vrot.lane.b32.xlu0 %v411_v11, %s3369_s12 }
 0x48b   :  { %310 = vrot.lane.b32.xlu1 %v308_v13, %s3369_s12 }
 0x48f   :  { %425 = vperm.xlu1 %3075, %v423_v14  }
 0x4fc   :  { %v414_v17 = vpop.permute.xlu0 %413 }
 0x4fd   :  { %v3585_v19 = vadd.f32 %v414_v17, %v406_v16  ;;  %v311_v21 = vpop.permute.xlu1 %310 }
 0x4fe   :  { %v3587_v22 = vadd.f32 %v311_v21, %v303_v18 }
 0x4ff   :  { %3097 = vtanh.f32 %v3585_v19 }
 0x500   :  { %3099 = vtanh.f32 %v3587_v22  ;;  %v3642_v3 = vsel %vm207_vm5, %v3587_v22, 0.0 }
 0x509   :  { %v3098_v23 = vpop.eup %3097 }
 0x50a   :  { %v3100_v24 = vpop.eup %3099  ;;  %419 = vrot.lane.b32.xlu1 %v3098_v23, %s3361_s2 }
 0x50b   :  { %316 = vrot.lane.b32.xlu0 %v3100_v24, %s3361_s2 }
 0x50e   :  { %v3593_v25 = vpop.permute.xlu1 %425 }
 0x50f   :  { %vm427_vm9 = vcmp.eq.s32.totalorder %v3593_v25, 1 }
 0x57c   :  { %v420_v26 = vpop.permute.xlu1 %419 }
 0x57d   :  { %v422_v27 = vmul.f32 %v420_v26, %v405_v4  ;;  %v317_v28 = vpop.permute.xlu0 %316 }
 0x57e   :  { %v319_v29 = vmul.f32 %v317_v28, %v302_v6  ;;  %v3649_v6 = vsel %vm427_vm9, %v3585_v19, %v3582_v15  ;;  %v758_v28 = vld [vmem:[#allocation2 + $0xc] sm:$0xf] }
 0x57f   :  { %v3599_v30 = vsel %vm427_vm9, %v422_v27, %v3540_v45 }
 0x580   :  { %431 = vrot.lane.b32.xlu0 %v3599_v30, %s3369_s12  ;;  %v3605_v31 = vsel %vm207_vm5, %v319_v29, 0.0 }
 0x581   :  { %435 = vrot.lane.b32.xlu1 %v3605_v31, %s3361_s2 }
 0x5f2   :  { %v432_v33 = vpop.permute.xlu0 %431 }
 0x5f3   :  { %v436_v35 = vpop.permute.xlu1 %435  ;;  %2633 = vmatmul.mubr.msk.f32.vlgmr.msra.gmra.mrb[2].mxu1 %vm103_vm6, %v432_v33 }
 0x5f4   :  { %v438_v36 = vsel %vm103_vm6, %v432_v33, %v436_v35  ;;  %2919 = vmatpush3.bf16.msra.mxu1 %v3518_v32  ;;  %2651 = vmatprep.mubr.msk.f32.mxu1 %vm3366_vm0, %v3367_v1 }
 0x5f5   :  { %2622 = vmatmul.mubr.msk.f32.vlgmr.msra.gmra.mrb[4].mxu0 %vm221_vm7, %v438_v36  ;;  %2920 = vmatprep.subr.bf16.mxu1 %v3365_v0 }
 0x5f6   :  { %2931 = vmatpush3.bf16.msra.mxu0 %v3483_v5  ;;  %2662 = vmatprep.mubr.msk.f32.mxu0 %vm3366_vm0, %v3367_v1 }
 0x5f7   :  { %2932 = vmatprep.subr.bf16.mxu0 %v3365_v0 }
 0x5f8   :  { %2922 = vmatpush3.bf16.msra.mxu1 %v3521_v34 }
 0x5f9   :  { %2923 = vmatprep.subr.bf16.mxu1 %v3365_v0 }
 0x5fa   :  { %2934 = vmatpush3.bf16.msra.mxu0 %v3486_v7 }
 0x5fb   :  { %2935 = vmatprep.subr.bf16.mxu0 %v3365_v0 }
 0x5fc   :  { %2925 = vmatpush3.bf16.msra.mxu1 %v3525_v37 }
 0x5fd   :  { %2926 = vmatprep.subr.bf16.mxu1 %v3365_v0 }
 0x600   :  { %2928 = vmatpush3.bf16.msra.mxu1 %v3530_v41 }
 0x601   :  { %2947 = vmatprep.subr.bf16.mxu1 %v3365_v0 }
 0x6c6   :  { %v610_v39 = vpop.f32.mrb[2].mxu1 }
 0x6c7   :  { %v614_v40 = vadd.f32 %v610_v39, %v541_v38  ;;  %v2634_v43 = vpop.f32.mrb[3].mxu1 }
 0x6c8   :  { %v508_v44 = vpop.f32.mrb[4].mxu0 }
 0x6c9   :  { %v2386_v45 = vmul.f32 -1.442695, %v614_v40  ;;  %v509_v46 = vadd.f32 %v3566_v49, %v508_v44  ;;  %v2623_v47 = vpop.f32.mrb[5].mxu0 }
 0x6cb   :  { %3101 = vpow2.f32 %v2386_v45  ;;  %v2384_v48 = vmul.f32 -1.442695, %v509_v46 }
 0x6cd   :  { %3103 = vpow2.f32 %v2384_v48 }
 0x6ce   :  { %3105 = vtanh.f32 %v614_v40 }
 0x6d5   :  { %v3102_v50 = vpop.eup %3101 }
 0x6d6   :  { %v619_v51 = vadd.f32 1.0, %v3102_v50 }
 0x6d7   :  { %v3104_v52 = vpop.eup %3103 }
 0x6d8   :  { %3107 = vrcp.f32 %v619_v51  ;;  %v516_v53 = vadd.f32 1.0, %v3104_v52  ;;  %v3106_v54 = vpop.eup %3105 }
 0x6d9   :  { %3109 = vtanh.f32 %v509_v46 }
 0x6da   :  { %3111 = vrcp.f32 %v516_v53 }
 0x6e2   :  { %v3108_v55 = vpop.eup %3107 }
 0x6e3   :  { %v3110_v56 = vpop.eup %3109  ;;  %v622_v57 = vsel %vm3507_vm4, %v3106_v54, %v3108_v55 }
 0x6e4   :  { %v3112_v58 = vpop.eup %3111  ;;  %625 = vrot.lane.b32.xlu1 %v622_v57, %s3361_s2  ;;  %v623_v12 = vmul.f32 %v622_v57, %v3649_v6 }
 0x6e5   :  { %v519_v59 = vsel %vm3507_vm4, %v3110_v56, %v3112_v58 }
 0x6e6   :  { %522 = vrot.lane.b32.xlu0 %v519_v59, %s3361_s2  ;;  %v520_v4 = vmul.f32 %v519_v59, %v3642_v3 }
 0x756   :  { %v626_v60 = vpop.permute.xlu1 %625 }
 0x757   :  { %v628_v61 = vmul.f32 %v626_v60, %v622_v57 }
 0x758   :  { %v523_v62 = vpop.permute.xlu0 %522 }
 0x759   :  { %v525_v63 = vmul.f32 %v523_v62, %v519_v59  ;;  %630 = vrot.lane.b32.xlu1 %v628_v61, %s3369_s12 }
 0x75b   :  { %527 = vrot.lane.b32.xlu0 %v525_v63, %s3369_s12 }
 0x75f   :  { %642 = vperm.xlu0 %3076, %v640_v2  }
 0x7cb   :  { %v631_v10 = vpop.permute.xlu1 %630 }
 0x7cc   :  { %v3654_v14 = vadd.f32 %v631_v10, %v623_v12 }
 0x7cd   :  { %v528_v11 = vpop.permute.xlu0 %527 }
 0x7ce   :  { %v3652_v13 = vadd.f32 %v528_v11, %v520_v4 }
 0x7d0   :  { %3113 = vtanh.f32 %v3652_v13  ;;  %v3718_v60 = vsel %vm427_vm9, %v3652_v13, %v3642_v3 }
 0x7d1   :  { %3115 = vtanh.f32 %v3654_v14 }
 0x7da   :  { %v3114_v42 = vpop.eup %3113 }
 0x7db   :  { %533 = vrot.lane.b32.xlu1 %v3114_v42, %s3361_s2  ;;  %v3116_v16 = vpop.eup %3115 }
 0x7de   :  { %v3660_v18 = vpop.permute.xlu0 %642 }
 0x7df   :  { %636 = vrot.lane.b32.xlu1 %v3116_v16, %s3361_s2  ;;  %vm644_vm11 = vcmp.eq.s32.totalorder %v3660_v18, 1 }
 0x7e0   :  { %v3711_v58 = vsel %vm644_vm11, %v3654_v14, %v3649_v6 }
 0x84d   :  { %v534_v15 = vpop.permute.xlu1 %533 }
 0x84e   :  { %v536_v17 = vmul.f32 %v534_v15, %v519_v59 }
 0x850   :  { %v3665_v19 = vsel %vm427_vm9, %v536_v17, %v3605_v31 }
 0x851   :  { %652 = vrot.lane.b32.xlu1 %v3665_v19, %s3361_s2  ;;  %v637_v21 = vpop.permute.xlu1 %636 }
 0x852   :  { %v639_v22 = vmul.f32 %v637_v21, %v622_v57  ;;  %v857_v57 = vsel %vm756_vm12, 1, %v3368_v9 }
 0x854   :  { %v3673_v23 = vsel %vm644_vm11, %v639_v22, %v3599_v30 }
 0x855   :  { %648 = vrot.lane.b32.xlu0 %v3673_v23, %s3369_s12 }
 0x8c3   :  { %v653_v24 = vpop.permute.xlu1 %652 }
 0x8c7   :  { %v649_v26 = vpop.permute.xlu0 %648 }
 0x8c8   :  { %v655_v27 = vsel %vm103_vm6, %v649_v26, %v653_v24  ;;  %2663 = vmatmul.mubr.msk.f32.vlgmr.msra.gmra.mrb[6].mxu0 %vm103_vm6, %v649_v26 }
 0x8c9   :  { %2652 = vmatmul.mubr.msk.f32.vlgmr.msra.gmra.mrb[4].mxu1 %vm221_vm7, %v655_v27  ;;  %2937 = vmatpush3.bf16.msra.mxu0 %v3518_v32 }
 0x8ca   :  { %2938 = vmatprep.subr.bf16.mxu0 %v3365_v0  ;;  %2949 = vmatpush3.bf16.msra.mxu1 %v3483_v5 }
 0x8cb   :  { %2950 = vmatprep.subr.bf16.mxu1 %v3365_v0  ;;  %2692 = vmatprep.mubr.msk.f32.mxu1 %vm3366_vm0, %v3367_v1 }
 0x8cc   :  { %2681 = vmatprep.mubr.msk.f32.mxu0 %vm3366_vm0, %v3367_v1 }
 0x8cd   :  { %2940 = vmatpush3.bf16.msra.mxu0 %v3521_v34 }
 0x8ce   :  { %2941 = vmatprep.subr.bf16.mxu0 %v3365_v0  ;;  %2952 = vmatpush3.bf16.msra.mxu1 %v3486_v7 }
 0x8cf   :  { %2953 = vmatprep.subr.bf16.mxu1 %v3365_v0 }
 0x8d1   :  { %2943 = vmatpush3.bf16.msra.mxu0 %v3525_v37 }
 0x8d2   :  { %2944 = vmatprep.subr.bf16.mxu0 %v3365_v0 }
 0x8d5   :  { %2946 = vmatpush3.bf16.msra.mxu0 %v3530_v41 }
 0x8d6   :  { %2965 = vmatprep.subr.bf16.mxu0 %v3365_v0 }
 0x99b   :  { %v827_v29 = vpop.f32.mrb[6].mxu0 }
 0x99c   :  { %v831_v30 = vadd.f32 %v827_v29, %v758_v28  ;;  %v725_v31 = vpop.f32.mrb[4].mxu1  ;;  %v2664_v33 = vpop.f32.mrb[7].mxu0 }
 0x99d   :  { %v726_v35 = vadd.f32 %v3566_v49, %v725_v31  ;;  %v2653_v36 = vpop.f32.mrb[5].mxu1 }
 0x99e   :  { %v2390_v38 = vmul.f32 -1.442695, %v831_v30 }
 0x99f   :  { %v2388_v39 = vmul.f32 -1.442695, %v726_v35 }
 0x9a0   :  { %3117 = vpow2.f32 %v2390_v38 }
 0x9a1   :  { %3119 = vpow2.f32 %v2388_v39 }
 0x9a2   :  { %3121 = vtanh.f32 %v831_v30 }
 0x9a3   :  { %3123 = vtanh.f32 %v726_v35 }
 0x9aa   :  { %v3118_v40 = vpop.eup %3117 }
 0x9ab   :  { %v3120_v43 = vpop.eup %3119  ;;  %v836_v44 = vadd.f32 1.0, %v3118_v40 }
 0x9ac   :  { %v733_v45 = vadd.f32 1.0, %v3120_v43  ;;  %v3122_v46 = vpop.eup %3121 }
 0x9ad   :  { %3125 = vrcp.f32 %v836_v44  ;;  %v3124_v47 = vpop.eup %3123 }
 0x9ae   :  { %3127 = vrcp.f32 %v733_v45 }
 0x9b7   :  { %v3126_v48 = vpop.eup %3125 }
 0x9b8   :  { %v3128_v50 = vpop.eup %3127  ;;  %v839_v51 = vsel %vm3507_vm4, %v3122_v46, %v3126_v48 }
 0x9b9   :  { %842 = vrot.lane.b32.xlu1 %v839_v51, %s3361_s2  ;;  %v736_v52 = vsel %vm3507_vm4, %v3124_v47, %v3128_v50  ;;  %v840_v59 = vmul.f32 %v839_v51, %v3711_v58  ;;  %v1074_v50 = vsel %vm973_vm14, 1, %v3368_v9 }
 0x9ba   :  { %739 = vrot.lane.b32.xlu0 %v736_v52, %s3361_s2  ;;  %v737_v62 = vmul.f32 %v736_v52, %v3718_v60 }
 0xa2b   :  { %v843_v53 = vpop.permute.xlu1 %842 }
 0xa2c   :  { %v845_v54 = vmul.f32 %v843_v53, %v839_v51  ;;  %v740_v55 = vpop.permute.xlu0 %739 }
 0xa2d   :  { %v742_v56 = vmul.f32 %v740_v55, %v736_v52 }
 0xa2e   :  { %847 = vrot.lane.b32.xlu1 %v845_v54, %s3369_s12 }
 0xa2f   :  { %744 = vrot.lane.b32.xlu0 %v742_v56, %s3369_s12 }
 0xa33   :  { %859 = vperm.xlu0 %3076, %v857_v57  }
 0xaa0   :  { %v848_v61 = vpop.permute.xlu1 %847 }
 0xaa1   :  { %v3721_v63 = vadd.f32 %v848_v61, %v840_v59  ;;  %v745_v2 = vpop.permute.xlu0 %744 }
 0xaa2   :  { %v3723_v4 = vadd.f32 %v745_v2, %v737_v62 }
 0xaa3   :  { %3129 = vtanh.f32 %v3721_v63 }
 0xaa4   :  { %3131 = vtanh.f32 %v3723_v4  ;;  %v3787_v54 = vsel %vm644_vm11, %v3723_v4, %v3718_v60 }
 0xaad   :  { %v3130_v6 = vpop.eup %3129 }
 0xaae   :  { %v3132_v10 = vpop.eup %3131  ;;  %853 = vrot.lane.b32.xlu0 %v3130_v6, %s3361_s2 }
 0xaaf   :  { %750 = vrot.lane.b32.xlu1 %v3132_v10, %s3361_s2 }
 0xab2   :  { %v3729_v25 = vpop.permute.xlu0 %859 }
 0xab3   :  { %vm861_vm13 = vcmp.eq.s32.totalorder %v3729_v25, 1 }
 0xb20   :  { %v854_v3 = vpop.permute.xlu0 %853 }
 0xb21   :  { %v856_v11 = vmul.f32 %v854_v3, %v839_v51  ;;  %v751_v12 = vpop.permute.xlu1 %750  ;;  %v3780_v51 = vsel %vm861_vm13, %v3721_v63, %v3711_v58 }
 0xb22   :  { %v753_v13 = vmul.f32 %v751_v12, %v736_v52  ;;  %v1192_v12 = vld [vmem:[#allocation2 + $0x14] sm:$0xf] }
 0xb23   :  { %v3735_v14 = vsel %vm861_vm13, %v856_v11, %v3673_v23 }
 0xb24   :  { %865 = vrot.lane.b32.xlu1 %v3735_v14, %s3369_s12  ;;  %v3742_v42 = vsel %vm644_vm11, %v753_v13, %v3665_v19  ;;  %v975_v19 = vld [vmem:[#allocation2 + $0x10] sm:$0xf] }
 0xb25   :  { %869 = vrot.lane.b32.xlu0 %v3742_v42, %s3361_s2 }
 0xb96   :  { %v866_v16 = vpop.permute.xlu1 %865 }
 0xb97   :  { %v870_v15 = vpop.permute.xlu0 %869  ;;  %2693 = vmatmul.mubr.msk.f32.vlgmr.msra.gmra.mrb[6].mxu1 %vm103_vm6, %v866_v16 }
 0xb98   :  { %v872_v17 = vsel %vm103_vm6, %v866_v16, %v870_v15  ;;  %2955 = vmatpush3.bf16.msra.mxu1 %v3518_v32  ;;  %2711 = vmatprep.mubr.msk.f32.mxu1 %vm3366_vm0, %v3367_v1 }
 0xb99   :  { %2682 = vmatmul.mubr.msk.f32.vlgmr.msra.gmra.mrb[8].mxu0 %vm221_vm7, %v872_v17  ;;  %2956 = vmatprep.subr.bf16.mxu1 %v3365_v0 }
 0xb9a   :  { %2967 = vmatpush3.bf16.msra.mxu0 %v3483_v5  ;;  %2722 = vmatprep.mubr.msk.f32.mxu0 %vm3366_vm0, %v3367_v1 }
 0xb9b   :  { %2968 = vmatprep.subr.bf16.mxu0 %v3365_v0 }
 0xb9c   :  { %2958 = vmatpush3.bf16.msra.mxu1 %v3521_v34 }
 0xb9d   :  { %2959 = vmatprep.subr.bf16.mxu1 %v3365_v0 }
 0xb9e   :  { %2970 = vmatpush3.bf16.msra.mxu0 %v3486_v7 }
 0xb9f   :  { %2971 = vmatprep.subr.bf16.mxu0 %v3365_v0 }
 0xba0   :  { %2961 = vmatpush3.bf16.msra.mxu1 %v3525_v37 }
 0xba1   :  { %2962 = vmatprep.subr.bf16.mxu1 %v3365_v0 }
 0xba4   :  { %2964 = vmatpush3.bf16.msra.mxu1 %v3530_v41 }
 0xba5   :  { %2983 = vmatprep.subr.bf16.mxu1 %v3365_v0 }
 0xc6a   :  { %v1044_v21 = vpop.f32.mrb[6].mxu1 }
 0xc6b   :  { %v1048_v22 = vadd.f32 %v1044_v21, %v975_v19  ;;  %v2694_v23 = vpop.f32.mrb[7].mxu1 }
 0xc6c   :  { %v942_v24 = vpop.f32.mrb[8].mxu0 }
 0xc6d   :  { %v2394_v26 = vmul.f32 -1.442695, %v1048_v22  ;;  %v943_v27 = vadd.f32 %v3566_v49, %v942_v24  ;;  %v2683_v28 = vpop.f32.mrb[9].mxu0 }
 0xc6f   :  { %3133 = vpow2.f32 %v2394_v26  ;;  %v2392_v29 = vmul.f32 -1.442695, %v943_v27 }
 0xc71   :  { %3135 = vpow2.f32 %v2392_v29 }
 0xc72   :  { %3137 = vtanh.f32 %v1048_v22 }
 0xc79   :  { %v3134_v30 = vpop.eup %3133 }
 0xc7a   :  { %v1053_v31 = vadd.f32 1.0, %v3134_v30 }
 0xc7b   :  { %v3136_v33 = vpop.eup %3135 }
 0xc7c   :  { %3139 = vrcp.f32 %v1053_v31  ;;  %v950_v35 = vadd.f32 1.0, %v3136_v33  ;;  %v3138_v36 = vpop.eup %3137 }
 0xc7d   :  { %3141 = vtanh.f32 %v943_v27 }
 0xc7e   :  { %3143 = vrcp.f32 %v950_v35 }
 0xc86   :  { %v3140_v38 = vpop.eup %3139 }
 0xc87   :  { %v3142_v39 = vpop.eup %3141  ;;  %v1056_v40 = vsel %vm3507_vm4, %v3138_v36, %v3140_v38 }
 0xc88   :  { %v3144_v43 = vpop.eup %3143  ;;  %1059 = vrot.lane.b32.xlu0 %v1056_v40, %s3361_s2  ;;  %v1057_v52 = vmul.f32 %v1056_v40, %v3780_v51 }
 0xc89   :  { %v953_v44 = vsel %vm3507_vm4, %v3142_v39, %v3144_v43 }
 0xc8a   :  { %956 = vrot.lane.b32.xlu1 %v953_v44, %s3361_s2  ;;  %v954_v56 = vmul.f32 %v953_v44, %v3787_v54 }
 0xcfa   :  { %v1060_v45 = vpop.permute.xlu0 %1059 }
 0xcfb   :  { %v1062_v46 = vmul.f32 %v1060_v45, %v1056_v40 }
 0xcfc   :  { %v957_v47 = vpop.permute.xlu1 %956 }
 0xcfd   :  { %v959_v48 = vmul.f32 %v957_v47, %v953_v44  ;;  %1064 = vrot.lane.b32.xlu0 %v1062_v46, %s3369_s12 }
 0xcff   :  { %961 = vrot.lane.b32.xlu1 %v959_v48, %s3369_s12 }
 0xd03   :  { %1076 = vperm.xlu1 %3075, %v1074_v50  }
 0xd6f   :  { %v1065_v53 = vpop.permute.xlu0 %1064 }
 0xd70   :  { %v3789_v55 = vadd.f32 %v1065_v53, %v1057_v52 }
 0xd71   :  { %v962_v57 = vpop.permute.xlu1 %961 }
 0xd72   :  { %3145 = vtanh.f32 %v3789_v55  ;;  %v3793_v59 = vadd.f32 %v962_v57, %v954_v56 }
 0xd74   :  { %3147 = vtanh.f32 %v3793_v59  ;;  %v3858_v47 = vsel %vm861_vm13, %v3793_v59, %v3787_v54 }
 0xd7c   :  { %v3146_v58 = vpop.eup %3145 }
 0xd7d   :  { %1070 = vrot.lane.b32.xlu1 %v3146_v58, %s3361_s2 }
 0xd7e   :  { %v3148_v61 = vpop.eup %3147 }
 0xd7f   :  { %967 = vrot.lane.b32.xlu0 %v3148_v61, %s3361_s2 }
 0xd82   :  { %v3798_v18 = vpop.permute.xlu1 %1076 }
 0xd83   :  { %vm1078_vm15 = vcmp.eq.s32.totalorder %v3798_v18, 1 }
 0xd84   :  { %v3849_v43 = vsel %vm1078_vm15, %v3789_v55, %v3780_v51 }
 0xdef   :  { %v1071_v60 = vpop.permute.xlu1 %1070 }
 0xdf0   :  { %v1073_v62 = vmul.f32 %v1071_v60, %v1056_v40  ;;  %v1291_v40 = vsel %vm1190_vm1, 1, %v3368_v9 }
 0xdf1   :  { %v968_v63 = vpop.permute.xlu0 %967 }
 0xdf2   :  { %v970_v2 = vmul.f32 %v968_v63, %v953_v44  ;;  %v3804_v4 = vsel %vm1078_vm15, %v1073_v62, %v3735_v14  ;;  %v1409_v63 = vld [vmem:[#allocation2 + $0x18] sm:$0xf] }
 0xdf3   :  { %1082 = vrot.lane.b32.xlu0 %v3804_v4, %s3369_s12 }
 0xdf4   :  { %v3811_v6 = vsel %vm861_vm13, %v970_v2, %v3742_v42 }
 0xdf5   :  { %1086 = vrot.lane.b32.xlu1 %v3811_v6, %s3361_s2 }
 0xe65   :  { %v1083_v10 = vpop.permute.xlu0 %1082 }
 0xe66   :  { %2723 = vmatmul.mubr.msk.f32.vlgmr.msra.gmra.mrb[10].mxu0 %vm103_vm6, %v1083_v10 }
 0xe67   :  { %v1087_v3 = vpop.permute.xlu1 %1086  ;;  %2973 = vmatpush3.bf16.msra.mxu0 %v3518_v32  ;;  %2741 = vmatprep.mubr.msk.f32.mxu0 %vm3366_vm0, %v3367_v1 }
 0xe68   :  { %v1089_v11 = vsel %vm103_vm6, %v1083_v10, %v1087_v3  ;;  %2974 = vmatprep.subr.bf16.mxu0 %v3365_v0 }
 0xe69   :  { %2712 = vmatmul.mubr.msk.f32.vlgmr.msra.gmra.mrb[8].mxu1 %vm221_vm7, %v1089_v11 }
 0xe6a   :  { %2985 = vmatpush3.bf16.msra.mxu1 %v3483_v5  ;;  %2752 = vmatprep.mubr.msk.f32.mxu1 %vm3366_vm0, %v3367_v1 }
 0xe6b   :  { %2976 = vmatpush3.bf16.msra.mxu0 %v3521_v34  ;;  %2986 = vmatprep.subr.bf16.mxu1 %v3365_v0 }
 0xe6c   :  { %2977 = vmatprep.subr.bf16.mxu0 %v3365_v0 }
 0xe6e   :  { %2988 = vmatpush3.bf16.msra.mxu1 %v3486_v7 }
 0xe6f   :  { %2979 = vmatpush3.bf16.msra.mxu0 %v3525_v37  ;;  %2989 = vmatprep.subr.bf16.mxu1 %v3365_v0 }
 0xe70   :  { %2980 = vmatprep.subr.bf16.mxu0 %v3365_v0 }
 0xe73   :  { %2982 = vmatpush3.bf16.msra.mxu0 %v3530_v41 }
 0xe74   :  { %3001 = vmatprep.subr.bf16.mxu0 %v3365_v0 }
 0xf39   :  { %v1261_v13 = vpop.f32.mrb[10].mxu0 }
 0xf3a   :  { %v1265_v14 = vadd.f32 %v1261_v13, %v1192_v12  ;;  %v2724_v42 = vpop.f32.mrb[11].mxu0 }
 0xf3c   :  { %v2398_v16 = vmul.f32 -1.442695, %v1265_v14  ;;  %v1159_v15 = vpop.f32.mrb[8].mxu1 }
 0xf3d   :  { %v1160_v17 = vadd.f32 %v3566_v49, %v1159_v15  ;;  %v2713_v19 = vpop.f32.mrb[9].mxu1 }
 0xf3e   :  { %3149 = vpow2.f32 %v2398_v16 }
 0xf3f   :  { %v2396_v21 = vmul.f32 -1.442695, %v1160_v17 }
 0xf41   :  { %3151 = vpow2.f32 %v2396_v21 }
 0xf42   :  { %3153 = vtanh.f32 %v1265_v14 }
 0xf48   :  { %v3150_v22 = vpop.eup %3149 }
 0xf49   :  { %v1270_v23 = vadd.f32 1.0, %v3150_v22 }
 0xf4b   :  { %v3152_v24 = vpop.eup %3151  ;;  %3155 = vrcp.f32 %v1270_v23 }
 0xf4c   :  { %v1167_v26 = vadd.f32 1.0, %v3152_v24  ;;  %3157 = vtanh.f32 %v1160_v17  ;;  %v3154_v27 = vpop.eup %3153 }
 0xf4e   :  { %3159 = vrcp.f32 %v1167_v26 }
 0xf55   :  { %v3156_v28 = vpop.eup %3155 }
 0xf56   :  { %v1273_v29 = vsel %vm3507_vm4, %v3154_v27, %v3156_v28  ;;  %v3158_v30 = vpop.eup %3157 }
 0xf57   :  { %1276 = vrot.lane.b32.xlu1 %v1273_v29, %s3361_s2  ;;  %v1274_v44 = vmul.f32 %v1273_v29, %v3849_v43 }
 0xf58   :  { %v3160_v31 = vpop.eup %3159 }
 0xf59   :  { %v1170_v33 = vsel %vm3507_vm4, %v3158_v30, %v3160_v31  ;;  %v1508_v30 = vsel %vm1407_vm3, 1, %v3368_v9 }
 0xf5a   :  { %1173 = vrot.lane.b32.xlu0 %v1170_v33, %s3361_s2  ;;  %v1171_v48 = vmul.f32 %v1170_v33, %v3858_v47 }
 0xfc9   :  { %v1277_v35 = vpop.permute.xlu1 %1276 }
 0xfca   :  { %v1279_v36 = vmul.f32 %v1277_v35, %v1273_v29 }
 0xfcc   :  { %1281 = vrot.lane.b32.xlu1 %v1279_v36, %s3369_s12  ;;  %v1174_v38 = vpop.permute.xlu0 %1173 }
 0xfcd   :  { %v1176_v39 = vmul.f32 %v1174_v38, %v1170_v33 }
 0xfcf   :  { %1178 = vrot.lane.b32.xlu0 %v1176_v39, %s3369_s12 }
 0xfd3   :  { %1293 = vperm.xlu0 %3076, %v1291_v40  }
0x103e   :  { %v1282_v45 = vpop.permute.xlu1 %1281 }
0x103f   :  { %v3852_v46 = vadd.f32 %v1282_v45, %v1274_v44 }
0x1041   :  { %3161 = vtanh.f32 %v3852_v46  ;;  %v1179_v50 = vpop.permute.xlu0 %1178 }
0x1042   :  { %v3862_v52 = vadd.f32 %v1179_v50, %v1171_v48 }
0x1044   :  { %3163 = vtanh.f32 %v3862_v52  ;;  %v3927_v8 = vsel %vm1078_vm15, %v3862_v52, %v3858_v47 }
0x104b   :  { %v3162_v51 = vpop.eup %3161 }
0x104c   :  { %1287 = vrot.lane.b32.xlu0 %v3162_v51, %s3361_s2 }
0x104e   :  { %v3164_v53 = vpop.eup %3163 }
0x104f   :  { %1184 = vrot.lane.b32.xlu1 %v3164_v53, %s3361_s2 }
0x1052   :  { %v3867_v55 = vpop.permute.xlu0 %1293 }
0x1053   :  { %vm1295_vm2 = vcmp.eq.s32.totalorder %v3867_v55, 1 }
0x1054   :  { %v3918_v31 = vsel %vm1295_vm2, %v3852_v46, %v3849_v43 }
0x10be   :  { %v1288_v25 = vpop.permute.xlu0 %1287 }
0x10bf   :  { %v1290_v54 = vmul.f32 %v1288_v25, %v1273_v29 }
0x10c1   :  { %v1185_v56 = vpop.permute.xlu1 %1184  ;;  %v3873_v57 = vsel %vm1295_vm2, %v1290_v54, %v3804_v4  ;;  %v1626_v54 = vld [vmem:[#allocation2 + $0x1c] sm:$0xf] }
0x10c2   :  { %v1187_v59 = vmul.f32 %v1185_v56, %v1170_v33  ;;  %1299 = vrot.lane.b32.xlu1 %v3873_v57, %s3369_s12 }
0x10c4   :  { %v3880_v58 = vsel %vm1078_vm15, %v1187_v59, %v3811_v6 }
0x10c5   :  { %1303 = vrot.lane.b32.xlu0 %v3880_v58, %s3361_s2 }
0x1134   :  { %v1300_v61 = vpop.permute.xlu1 %1299 }
0x1135   :  { %2753 = vmatmul.mubr.msk.f32.vlgmr.msra.gmra.mrb[10].mxu1 %vm103_vm6, %v1300_v61 }
0x1136   :  { %2991 = vmatpush3.bf16.msra.mxu1 %v3518_v32  ;;  %2771 = vmatprep.mubr.msk.f32.mxu1 %vm3366_vm0, %v3367_v1 }
0x1137   :  { %v1304_v60 = vpop.permute.xlu0 %1303  ;;  %2992 = vmatprep.subr.bf16.mxu1 %v3365_v0 }
0x1138   :  { %v1306_v62 = vsel %vm103_vm6, %v1300_v61, %v1304_v60 }
0x1139   :  { %2742 = vmatmul.mubr.msk.f32.vlgmr.msra.gmra.mrb[12].mxu0 %vm221_vm7, %v1306_v62 }
0x113a   :  { %3003 = vmatpush3.bf16.msra.mxu0 %v3483_v5  ;;  %2994 = vmatpush3.bf16.msra.mxu1 %v3521_v34 }
0x113b   :  { %3004 = vmatprep.subr.bf16.mxu0 %v3365_v0  ;;  %2995 = vmatprep.subr.bf16.mxu1 %v3365_v0 }
0x113c   :  { %2782 = vmatprep.mubr.msk.f32.mxu0 %vm3366_vm0, %v3367_v1 }
0x113e   :  { %3006 = vmatpush3.bf16.msra.mxu0 %v3486_v7  ;;  %2997 = vmatpush3.bf16.msra.mxu1 %v3525_v37 }
0x113f   :  { %2998 = vmatprep.subr.bf16.mxu1 %v3365_v0  ;;  %3007 = vmatprep.subr.bf16.mxu0 %v3365_v0 }
0x1142   :  { %3000 = vmatpush3.bf16.msra.mxu1 %v3530_v41 }
0x1143   :  { %3019 = vmatprep.subr.bf16.mxu1 %v3365_v0 }
0x1208   :  { %v1478_v2 = vpop.f32.mrb[10].mxu1 }
0x1209   :  { %v1482_v4 = vadd.f32 %v1478_v2, %v1409_v63  ;;  %v2754_v6 = vpop.f32.mrb[11].mxu1 }
0x120b   :  { %v2402_v10 = vmul.f32 -1.442695, %v1482_v4 }
0x120c   :  { %v1376_v3 = vpop.f32.mrb[12].mxu0 }
0x120d   :  { %3165 = vpow2.f32 %v2402_v10  ;;  %v1377_v11 = vadd.f32 %v3566_v49, %v1376_v3  ;;  %v2743_v12 = vpop.f32.mrb[13].mxu0 }
0x120f   :  { %v2400_v13 = vmul.f32 -1.442695, %v1377_v11 }
0x1211   :  { %3167 = vpow2.f32 %v2400_v13 }
0x1212   :  { %3169 = vtanh.f32 %v1482_v4 }
0x1217   :  { %v3166_v14 = vpop.eup %3165 }
0x1218   :  { %v1487_v42 = vadd.f32 1.0, %v3166_v14 }
0x121a   :  { %3171 = vrcp.f32 %v1487_v42 }
0x121b   :  { %v3168_v16 = vpop.eup %3167  ;;  %3173 = vtanh.f32 %v1377_v11 }
0x121c   :  { %v1384_v15 = vadd.f32 1.0, %v3168_v16  ;;  %v3170_v17 = vpop.eup %3169 }
0x121e   :  { %3175 = vrcp.f32 %v1384_v15 }
0x1224   :  { %v3172_v19 = vpop.eup %3171 }
0x1225   :  { %v1490_v21 = vsel %vm3507_vm4, %v3170_v17, %v3172_v19  ;;  %v3174_v22 = vpop.eup %3173  ;;  %v3983_v19 = vld [vmem:[%s4173_s1] sm:$0xf] }
0x1226   :  { %1493 = vrot.lane.b32.xlu0 %v1490_v21, %s3361_s2  ;;  %v1491_v33 = vmul.f32 %v1490_v21, %v3918_v31  ;;  %vm1624_vm8 = vcmp.gt.s32.totalorder %v3983_v19, 7  ;;  %vm1841_vm10 = vcmp.gt.s32.totalorder %v3983_v19, 8 }
0x1228   :  { %v3176_v23 = vpop.eup %3175 }
0x1229   :  { %v1387_v24 = vsel %vm3507_vm4, %v3174_v22, %v3176_v23 }
0x122a   :  { %1390 = vrot.lane.b32.xlu1 %v1387_v24, %s3361_s2  ;;  %v1388_v38 = vmul.f32 %v1387_v24, %v3927_v8 }
0x1298   :  { %v1494_v26 = vpop.permute.xlu0 %1493 }
0x1299   :  { %v1496_v27 = vmul.f32 %v1494_v26, %v1490_v21 }
0x129b   :  { %1498 = vrot.lane.b32.xlu0 %v1496_v27, %s3369_s12 }
0x129c   :  { %v1391_v28 = vpop.permute.xlu1 %1390 }
0x129d   :  { %v1393_v29 = vmul.f32 %v1391_v28, %v1387_v24 }
0x129f   :  { %1395 = vrot.lane.b32.xlu1 %v1393_v29, %s3369_s12 }
0x12a3   :  { %1510 = vperm.xlu1 %3075, %v1508_v30  }
0x130d   :  { %v1499_v35 = vpop.permute.xlu0 %1498 }
0x130e   :  { %v3921_v36 = vadd.f32 %v1499_v35, %v1491_v33 }
0x1310   :  { %3177 = vtanh.f32 %v3921_v36 }
0x1311   :  { %v1396_v39 = vpop.permute.xlu1 %1395 }
0x1312   :  { %v3931_v40 = vadd.f32 %v1396_v39, %v1388_v38 }
0x1314   :  { %3179 = vtanh.f32 %v3931_v40  ;;  %v4002_v27 = vsel %vm1295_vm2, %v3931_v40, %v3927_v8 }
0x131a   :  { %v3178_v43 = vpop.eup %3177 }
0x131b   :  { %1504 = vrot.lane.b32.xlu1 %v3178_v43, %s3361_s2 }
0x131e   :  { %v3180_v44 = vpop.eup %3179 }
0x131f   :  { %1401 = vrot.lane.b32.xlu0 %v3180_v44, %s3361_s2 }
0x1322   :  { %v3936_v45 = vpop.permute.xlu1 %1510 }
0x1323   :  { %vm1512_vm5 = vcmp.eq.s32.totalorder %v3936_v45, 1 }
0x1324   :  { %v3992_v22 = vsel %vm1512_vm5, %v3921_v36, %v3918_v31 }
0x138d   :  { %v1505_v18 = vpop.permute.xlu1 %1504 }
0x138e   :  { %v1507_v46 = vmul.f32 %v1505_v18, %v1490_v21  ;;  %v1725_v21 = vsel %vm1624_vm8, 1, %v3368_v9 }
0x1390   :  { %v3942_v47 = vsel %vm1512_vm5, %v1507_v46, %v3873_v57  ;;  %v1843_v46 = vld [vmem:[#allocation2 + $0x20] sm:$0xf] }
0x1391   :  { %v1402_v48 = vpop.permute.xlu0 %1401  ;;  %1516 = vrot.lane.b32.xlu0 %v3942_v47, %s3369_s12 }
0x1392   :  { %v1404_v50 = vmul.f32 %v1402_v48, %v1387_v24 }
0x1394   :  { %v3949_v52 = vsel %vm1295_vm2, %v1404_v50, %v3880_v58 }
0x1395   :  { %1520 = vrot.lane.b32.xlu1 %v3949_v52, %s3361_s2 }
0x1403   :  { %v1517_v51 = vpop.permute.xlu0 %1516 }
0x1404   :  { %2783 = vmatmul.mubr.msk.f32.vlgmr.msra.gmra.mrb[14].mxu0 %vm103_vm6, %v1517_v51 }
0x1405   :  { %3009 = vmatpush3.bf16.msra.mxu0 %v3518_v32  ;;  %2801 = vmatprep.mubr.msk.f32.mxu0 %vm3366_vm0, %v3367_v1 }
0x1406   :  { %3010 = vmatprep.subr.bf16.mxu0 %v3365_v0 }
0x1407   :  { %v1521_v53 = vpop.permute.xlu1 %1520 }
0x1408   :  { %v1523_v25 = vsel %vm103_vm6, %v1517_v51, %v1521_v53  ;;  %v4049_v51 = vld [vmem:[%s4176_s4] ss:$0 sm:$0xff] }
0x1409   :  { %2772 = vmatmul.mubr.msk.f32.vlgmr.msra.gmra.mrb[12].mxu1 %vm221_vm7, %v1523_v25  ;;  %3012 = vmatpush3.bf16.msra.mxu0 %v3521_v34 }
0x140a   :  { %3021 = vmatpush3.bf16.msra.mxu1 %v3483_v5  ;;  %3013 = vmatprep.subr.bf16.mxu0 %v3365_v0 }
0x140b   :  { %3022 = vmatprep.subr.bf16.mxu1 %v3365_v0  ;;  %2812 = vmatprep.mubr.msk.f32.mxu1 %vm3366_vm0, %v3367_v1 }
0x140d   :  { %3015 = vmatpush3.bf16.msra.mxu0 %v3525_v37 }
0x140e   :  { %3024 = vmatpush3.bf16.msra.mxu1 %v3486_v7  ;;  %3016 = vmatprep.subr.bf16.mxu0 %v3365_v0 }
0x140f   :  { %3025 = vmatprep.subr.bf16.mxu1 %v3365_v0 }
0x1411   :  { %3018 = vmatpush3.bf16.msra.mxu0 %v3530_v41 }
0x1412   :  { %3037 = vmatprep.subr.bf16.mxu0 %v3365_v0 }
0x14d7   :  { %v1695_v56 = vpop.f32.mrb[14].mxu0 }
0x14d8   :  { %v1699_v57 = vadd.f32 %v1695_v56, %v1626_v54  ;;  %v2784_v59 = vpop.f32.mrb[15].mxu0 }
0x14da   :  { %v2406_v58 = vmul.f32 -1.442695, %v1699_v57 }
0x14dc   :  { %3181 = vpow2.f32 %v2406_v58  ;;  %v1593_v61 = vpop.f32.mrb[12].mxu1 }
0x14dd   :  { %v1594_v60 = vadd.f32 %v3566_v49, %v1593_v61  ;;  %v2773_v62 = vpop.f32.mrb[13].mxu1 }
0x14df   :  { %v2404_v63 = vmul.f32 -1.442695, %v1594_v60 }
0x14e1   :  { %3183 = vpow2.f32 %v2404_v63 }
0x14e2   :  { %3185 = vtanh.f32 %v1699_v57 }
0x14e6   :  { %v3182_v2 = vpop.eup %3181 }
0x14e7   :  { %v1704_v4 = vadd.f32 1.0, %v3182_v2 }
0x14e9   :  { %3187 = vrcp.f32 %v1704_v4 }
0x14ea   :  { %3189 = vtanh.f32 %v1594_v60 }
0x14eb   :  { %v3184_v6 = vpop.eup %3183 }
0x14ec   :  { %v1601_v10 = vadd.f32 1.0, %v3184_v6  ;;  %v3186_v3 = vpop.eup %3185 }
0x14ee   :  { %3191 = vrcp.f32 %v1601_v10 }
0x14f3   :  { %v3188_v11 = vpop.eup %3187 }
0x14f4   :  { %v1707_v12 = vsel %vm3507_vm4, %v3186_v3, %v3188_v11  ;;  %v3190_v13 = vpop.eup %3189  ;;  %v1942_v11 = vsel %vm1841_vm10, 1, %v3368_v9 }
0x14f5   :  { %1710 = vrot.lane.b32.xlu1 %v1707_v12, %s3361_s2  ;;  %v1708_v23 = vmul.f32 %v1707_v12, %v3992_v22 }
0x14f8   :  { %v3192_v49 = vpop.eup %3191 }
0x14f9   :  { %v1604_v14 = vsel %vm3507_vm4, %v3190_v13, %v3192_v49 }
0x14fa   :  { %1607 = vrot.lane.b32.xlu0 %v1604_v14, %s3361_s2  ;;  %v1605_v28 = vmul.f32 %v1604_v14, %v4002_v27 }
0x1567   :  { %v1711_v42 = vpop.permute.xlu1 %1710 }
0x1568   :  { %v1713_v16 = vmul.f32 %v1711_v42, %v1707_v12 }
0x156a   :  { %1715 = vrot.lane.b32.xlu1 %v1713_v16, %s3369_s12 }
0x156c   :  { %v1608_v15 = vpop.permute.xlu0 %1607 }
0x156d   :  { %v1610_v17 = vmul.f32 %v1608_v15, %v1604_v14 }
0x156f   :  { %1612 = vrot.lane.b32.xlu0 %v1610_v17, %s3369_s12 }
0x1573   :  { %1727 = vperm.xlu0 %3076, %v1725_v21  }
0x15dc   :  { %v1716_v24 = vpop.permute.xlu1 %1715 }
0x15dd   :  { %v3995_v26 = vadd.f32 %v1716_v24, %v1708_v23 }
0x15df   :  { %3193 = vtanh.f32 %v3995_v26 }
0x15e1   :  { %v1613_v29 = vpop.permute.xlu0 %1612 }
0x15e2   :  { %v4005_v30 = vadd.f32 %v1613_v29, %v1605_v28 }
0x15e4   :  { %3195 = vtanh.f32 %v4005_v30  ;;  %v4076_v42 = vsel %vm1512_vm5, %v4005_v30, %v4002_v27 }
0x15e9   :  { %v3194_v31 = vpop.eup %3193 }
0x15ea   :  { %1721 = vrot.lane.b32.xlu0 %v3194_v31, %s3361_s2 }
0x15ee   :  { %v3196_v33 = vpop.eup %3195 }
0x15ef   :  { %1618 = vrot.lane.b32.xlu1 %v3196_v33, %s3361_s2 }
0x15f2   :  { %v4010_v35 = vpop.permute.xlu0 %1727 }
0x15f3   :  { %vm1729_vm9 = vcmp.eq.s32.totalorder %v4010_v35, 1 }
0x165c   :  { %v1722_v36 = vpop.permute.xlu0 %1721 }
0x165d   :  { %v1724_v38 = vmul.f32 %v1722_v36, %v1707_v12  ;;  %v4066_v12 = vsel %vm1729_vm9, %v3995_v26, %v3992_v22 }
0x165f   :  { %v4016_v55 = vsel %vm1729_vm9, %v1724_v38, %v3942_v47 }
0x1660   :  { %1733 = vrot.lane.b32.xlu1 %v4016_v55, %s3369_s12 }
0x1661   :  { %v1619_v8 = vpop.permute.xlu1 %1618 }
0x1662   :  { %v1621_v39 = vmul.f32 %v1619_v8, %v1604_v14 }
0x1664   :  { %v4023_v40 = vsel %vm1512_vm5, %v1621_v39, %v3949_v52 }
0x1665   :  { %1737 = vrot.lane.b32.xlu0 %v4023_v40, %s3361_s2 }
0x16d2   :  { %v1734_v43 = vpop.permute.xlu1 %1733 }
0x16d3   :  { %2813 = vmatmul.mubr.msk.f32.vlgmr.msra.gmra.mrb[14].mxu1 %vm103_vm6, %v1734_v43 }
0x16d4   :  { %3027 = vmatpush3.bf16.msra.mxu1 %v3518_v32  ;;  %2831 = vmatprep.mubr.msk.f32.mxu1 %vm3366_vm0, %v3367_v1 }
0x16d5   :  { %3028 = vmatprep.subr.bf16.mxu1 %v3365_v0 }
0x16d7   :  { %v1738_v44 = vpop.permute.xlu0 %1737 }
0x16d8   :  { %v1740_v18 = vsel %vm103_vm6, %v1734_v43, %v1738_v44  ;;  %3030 = vmatpush3.bf16.msra.mxu1 %v3521_v34 }
0x16d9   :  { %2802 = vmatmul.mubr.msk.f32.vlgmr.msra.gmra.mrb[16].mxu0 %vm221_vm7, %v1740_v18  ;;  %3031 = vmatprep.subr.bf16.mxu1 %v3365_v0 }
0x16da   :  { %3039 = vmatpush3.bf16.msra.mxu0 %v3483_v5  ;;  %2842 = vmatprep.mubr.msk.f32.mxu0 %vm3366_vm0, %v3367_v1 }
0x16db   :  { %3040 = vmatprep.subr.bf16.mxu0 %v3365_v0 }
0x16dc   :  { %3033 = vmatpush3.bf16.msra.mxu1 %v3525_v37 }
0x16dd   :  { %3034 = vmatprep.subr.bf16.mxu1 %v3365_v0 }
0x16de   :  { %3042 = vmatpush3.bf16.msra.mxu0 %v3486_v7 }
0x16df   :  { %3043 = vmatprep.subr.bf16.mxu0 %v3365_v0 }
0x16e0   :  { %3036 = vmatpush3.bf16.msra.mxu1 %v3530_v41 }
0x16e1   :  { %3055 = vmatprep.subr.bf16.mxu1 %v3365_v0 }
0x17a6   :  { %v1912_v47 = vpop.f32.mrb[14].mxu1 }
0x17a7   :  { %v1916_v5 = vadd.f32 %v1912_v47, %v1843_v46  ;;  %v2814_v48 = vpop.f32.mrb[15].mxu1 }
0x17a9   :  { %v2410_v50 = vmul.f32 -1.442695, %v1916_v5 }
0x17ab   :  { %3197 = vpow2.f32 %v2410_v50 }
0x17ac   :  { %v1810_v52 = vpop.f32.mrb[16].mxu0 }
0x17ad   :  { %v1811_v7 = vadd.f32 %v4049_v51, %v1810_v52  ;;  %v2803_v53 = vpop.f32.mrb[17].mxu0 }
0x17af   :  { %v2408_v25 = vmul.f32 -1.442695, %v1811_v7 }
0x17b1   :  { %3199 = vpow2.f32 %v2408_v25 }
0x17b2   :  { %3201 = vtanh.f32 %v1916_v5 }
0x17b5   :  { %v3198_v54 = vpop.eup %3197 }
0x17b6   :  { %v1921_v56 = vadd.f32 1.0, %v3198_v54 }
0x17b8   :  { %3203 = vrcp.f32 %v1921_v56 }
0x17b9   :  { %3205 = vtanh.f32 %v1811_v7 }
0x17bb   :  { %v3200_v57 = vpop.eup %3199 }
0x17bc   :  { %v1818_v59 = vadd.f32 1.0, %v3200_v57  ;;  %v3202_v58 = vpop.eup %3201 }
0x17be   :  { %3207 = vrcp.f32 %v1818_v59 }
0x17c2   :  { %v3204_v61 = vpop.eup %3203 }
0x17c3   :  { %v1924_v60 = vsel %vm3507_vm4, %v3202_v58, %v3204_v61  ;;  %v3206_v62 = vpop.eup %3205 }
0x17c4   :  { %1927 = vrot.lane.b32.xlu0 %v1924_v60, %s3361_s2  ;;  %v1925_v13 = vmul.f32 %v1924_v60, %v4066_v12 }
0x17c8   :  { %v3208_v63 = vpop.eup %3207 }
0x17c9   :  { %v1821_v2 = vsel %vm3507_vm4, %v3206_v62, %v3208_v63 }
0x17ca   :  { %1824 = vrot.lane.b32.xlu1 %v1821_v2, %s3361_s2  ;;  %v1822_v16 = vmul.f32 %v1821_v2, %v4076_v42 }
0x1836   :  { %v1928_v4 = vpop.permute.xlu0 %1927 }
0x1837   :  { %v1930_v6 = vmul.f32 %v1928_v4, %v1924_v60 }
0x1839   :  { %1932 = vrot.lane.b32.xlu0 %v1930_v6, %s3369_s12 }
0x183c   :  { %v1825_v10 = vpop.permute.xlu1 %1824 }
0x183d   :  { %v1827_v3 = vmul.f32 %v1825_v10, %v1821_v2 }
0x183f   :  { %1829 = vrot.lane.b32.xlu1 %v1827_v3, %s3369_s12 }
0x1843   :  { %1944 = vperm.xlu1 %3075, %v1942_v11  }
0x18ab   :  { %v1933_v49 = vpop.permute.xlu0 %1932 }
0x18ac   :  { %v4069_v14 = vadd.f32 %v1933_v49, %v1925_v13 }
0x18ae   :  { %3209 = vtanh.f32 %v4069_v14 }
0x18b1   :  { %v1830_v15 = vpop.permute.xlu1 %1829 }
0x18b2   :  { %v4079_v17 = vadd.f32 %v1830_v15, %v1822_v16 }
0x18b4   :  { %3211 = vtanh.f32 %v4079_v17  ;;  %v1839_v61 = vsel %vm1729_vm9, %v4079_v17, %v4076_v42 }
0x18b8   :  { %v3210_v21 = vpop.eup %3209 }
0x18b9   :  { %1938 = vrot.lane.b32.xlu1 %v3210_v21, %s3361_s2 }
0x18be   :  { %v3212_v22 = vpop.eup %3211 }
0x18bf   :  { %1835 = vrot.lane.b32.xlu0 %v3212_v22, %s3361_s2 }
0x18c2   :  { %v4084_v23 = vpop.permute.xlu1 %1944 }
0x18c3   :  { %vm1946_vm11 = vcmp.eq.s32.totalorder %v4084_v23, 1 }
0x18c4   :  { %v1947_v56 = vsel %vm1946_vm11, %v4069_v14, %v4066_v12 }
0x192b   :  { %v1939_v24 = vpop.permute.xlu1 %1938 }
0x192c   :  { %v1941_v26 = vmul.f32 %v1939_v24, %v1924_v60 }
0x192e   :  { %v4090_v45 = vsel %vm1946_vm11, %v1941_v26, %v4016_v55 }
0x192f   :  { %1950 = vrot.lane.b32.xlu0 %v4090_v45, %s3369_s12 }
0x1931   :  { %v1836_v27 = vpop.permute.xlu0 %1835 }
0x1932   :  { %v1838_v28 = vmul.f32 %v1836_v27, %v1821_v2 }
0x1934   :  { %v4097_v29 = vsel %vm1729_vm9, %v1838_v28, %v4023_v40 }
0x1935   :  { %1954 = vrot.lane.b32.xlu1 %v4097_v29, %s3361_s2 }
0x19a1   :  { %v1951_v30 = vpop.permute.xlu0 %1950 }
0x19a2   :  { %2843 = vmatmul.mubr.msk.f32.vlgmr.msra.gmra.mrb[18].mxu0 %vm103_vm6, %v1951_v30 }
0x19a3   :  { %3045 = vmatpush3.bf16.msra.mxu0 %v3518_v32  ;;  %2861 = vmatprep.mubr.msk.f32.mxu0 %vm3366_vm0, %v3367_v1  ;;  %v2060_v32 = vld [vmem:[#allocation2 + $0x24] sm:$0xf] }
0x19a4   :  { %3046 = vmatprep.subr.bf16.mxu0 %v3365_v0 }
0x19a7   :  { %v1955_v31 = vpop.permute.xlu1 %1954  ;;  %3048 = vmatpush3.bf16.msra.mxu0 %v3521_v34 }
0x19a8   :  { %v1957_v33 = vsel %vm103_vm6, %v1951_v30, %v1955_v31  ;;  %3049 = vmatprep.subr.bf16.mxu0 %v3365_v0  ;;  %v2273_v31 = vld [vmem:[#allocation8] sm:$0xff] }
0x19a9   :  { %2832 = vmatmul.mubr.msk.f32.vlgmr.msra.gmra.mrb[16].mxu1 %vm221_vm7, %v1957_v33  ;;  %v2274_v33 = vld [vmem:[#allocation8 + $0x8] sm:$0xff] }
0x19aa   :  { %2872 = vmatprep.mubr.msk.f32.mxu1 %vm3366_vm0, %v3367_v1  ;;  %vm2058_vm0 = vcmp.gt.s32.totalorder %v3983_v19, 9 }
0x19ab   :  { %3051 = vmatpush3.bf16.msra.mxu0 %v3525_v37  ;;  %v2159_v54 = vsel %vm2058_vm0, 1, %v3368_v9 }
0x19ac   :  { %3052 = vmatprep.subr.bf16.mxu0 %v3365_v0 }
0x19af   :  { %3054 = vmatpush3.bf16.msra.mxu0 %v3530_v41 }
0x1a75   :  { %v2129_v36 = vpop.f32.mrb[18].mxu0 }
0x1a76   :  { %v2133_v38 = vadd.f32 %v2129_v36, %v2060_v32  ;;  %v2844_v55 = vpop.f32.mrb[19].mxu0  ;;  %v2275_v32 = vld [vmem:[#allocation8 + $0x10] sm:$0xff]  ;;  %v3056_v36 = vpack.c.bf16 %v2274_v33, %v2273_v31 }
0x1a78   :  { %v2414_v34 = vmul.f32 -1.442695, %v2133_v38  ;;  %3057 = vmatpush3.bf16.msra.mxu1 %v3056_v36 }
0x1a79   :  { %3058 = vmatprep.subr.bf16.mxu1 %v3365_v0 }
0x1a7a   :  { %3213 = vpow2.f32 %v2414_v34 }
0x1a7c   :  { %v2027_v8 = vpop.f32.mrb[16].mxu1 }
0x1a7d   :  { %v2028_v39 = vadd.f32 %v4049_v51, %v2027_v8  ;;  %v2833_v40 = vpop.f32.mrb[17].mxu1 }
0x1a7e   :  { %v2417_v40 = vld [vmem:[%s4178_s6] ss:$0 sm:$0xff] }
0x1a7f   :  { %v2412_v43 = vmul.f32 -1.442695, %v2028_v39 }
0x1a81   :  { %3215 = vpow2.f32 %v2412_v43 }
0x1a82   :  { %3217 = vtanh.f32 %v2133_v38  ;;  %v2276_v38 = vld [vmem:[#allocation8 + $0x18] sm:$0xff] }
0x1a83   :  { %v3059_v20 = vpack.c.bf16 %v2276_v38, %v2275_v32 }
0x1a84   :  { %v3214_v44 = vpop.eup %3213 }
0x1a85   :  { %v2138_v1 = vadd.f32 1.0, %v3214_v44  ;;  %3060 = vmatpush3.bf16.msra.mxu1 %v3059_v20 }
0x1a87   :  { %3219 = vrcp.f32 %v2138_v1 }
0x1a88   :  { %3221 = vtanh.f32 %v2028_v39 }
0x1a8b   :  { %v3216_v37 = vpop.eup %3215 }
0x1a8c   :  { %v2035_v18 = vadd.f32 1.0, %v3216_v37  ;;  %v3218_v41 = vpop.eup %3217 }
0x1a8e   :  { %3223 = vrcp.f32 %v2035_v18 }
0x1a91   :  { %v3220_v46 = vpop.eup %3219 }
0x1a92   :  { %v2141_v47 = vsel %vm3507_vm4, %v3218_v41, %v3220_v46  ;;  %v3222_v5 = vpop.eup %3221 }
0x1a93   :  { %2144 = vrot.lane.b32.xlu1 %v2141_v47, %s3361_s2  ;;  %v2142_v57 = vmul.f32 %v2141_v47, %v1947_v56 }
0x1a98   :  { %v3224_v48 = vpop.eup %3223 }
0x1a99   :  { %v2038_v50 = vsel %vm3507_vm4, %v3222_v5, %v3224_v48 }
0x1a9a   :  { %2041 = vrot.lane.b32.xlu0 %v2038_v50, %s3361_s2  ;;  %v2039_v19 = vmul.f32 %v2038_v50, %v1839_v61 }
0x1b05   :  { %v2145_v52 = vpop.permute.xlu1 %2144 }
0x1b06   :  { %v2147_v7 = vmul.f32 %v2145_v52, %v2141_v47 }
0x1b08   :  { %2149 = vrot.lane.b32.xlu1 %v2147_v7, %s3369_s12 }
0x1b0c   :  { %v2042_v53 = vpop.permute.xlu0 %2041 }
0x1b0d   :  { %v2044_v25 = vmul.f32 %v2042_v53, %v2038_v50 }
0x1b0f   :  { %2046 = vrot.lane.b32.xlu0 %v2044_v25, %s3369_s12 }
0x1b13   :  { %2161 = vperm.xlu0 %3076, %v2159_v54  }
0x1b7a   :  { %v2150_v59 = vpop.permute.xlu1 %2149 }
0x1b7b   :  { %v2152_v58 = vadd.f32 %v2150_v59, %v2142_v57 }
0x1b7d   :  { %3225 = vtanh.f32 %v2152_v58 }
0x1b81   :  { %v2047_v60 = vpop.permute.xlu0 %2046 }
0x1b82   :  { %v2049_v62 = vadd.f32 %v2047_v60, %v2039_v19 }
0x1b84   :  { %3227 = vtanh.f32 %v2049_v62 }
0x1b87   :  { %v3226_v9 = vpop.eup %3225 }
0x1b88   :  { %2155 = vrot.lane.b32.xlu0 %v3226_v9, %s3361_s2 }
0x1b8e   :  { %v3228_v63 = vpop.eup %3227 }
0x1b8f   :  { %2052 = vrot.lane.b32.xlu1 %v3228_v63, %s3361_s2 }
0x1b92   :  { %v2162_v2 = vpop.permute.xlu0 %2161 }
0x1b93   :  { %vm2163_vm12 = vcmp.eq.s32.totalorder %v2162_v2, 1 }
0x1bfa   :  { %v2156_v4 = vpop.permute.xlu0 %2155 }
0x1bfb   :  { %v2158_v6 = vmul.f32 %v2156_v4, %v2141_v47 }
0x1bfd   :  { %v2164_v10 = vsel %vm2163_vm12, %v2158_v6, %v4090_v45 }
0x1bfe   :  { %2166 = vrot.lane.b32.xlu1 %v2164_v10, %s3369_s12 }
0x1c01   :  { %v2053_v35 = vpop.permute.xlu1 %2052 }
0x1c02   :  { %v2055_v3 = vmul.f32 %v2053_v35, %v2038_v50 }
0x1c04   :  { %v2057_v11 = vsel %vm1946_vm11, %v2055_v3, %v4097_v29 }
0x1c05   :  { %2170 = vrot.lane.b32.xlu0 %v2057_v11, %s3361_s2 }
0x1c70   :  { %v2167_v12 = vpop.permute.xlu1 %2166 }
0x1c77   :  { %v2171_v13 = vpop.permute.xlu0 %2170 }
0x1c78   :  { %v2173_v49 = vsel %vm103_vm6, %v2167_v12, %v2171_v13 }
0x1c79   :  { %2862 = vmatmul.mubr.msk.f32.vlgmr.msra.gmra.mrb[20].mxu0 %vm221_vm7, %v2173_v49 }
0x1d4c   :  { %v2243_v14 = vpop.f32.mrb[20].mxu0 }
0x1d4d   :  { %v2244_v42 = vadd.f32 %v4049_v51, %v2243_v14  ;;  %v2863_v16 = vpop.f32.mrb[21].mxu0  ;;  %v2056_v51 = vsel %vm1946_vm11, %v2049_v62, %v1839_v61 }
0x1d4f   :  { %v2416_v15 = vmul.f32 -1.442695, %v2244_v42 }
0x1d51   :  { %3229 = vpow2.f32 %v2416_v15 }
0x1d52   :  { %3231 = vtanh.f32 %v2244_v42 }
0x1d5b   :  { %v3230_v17 = vpop.eup %3229 }
0x1d5c   :  { %v2251_v21 = vadd.f32 1.0, %v3230_v17  ;;  %v3232_v22 = vpop.eup %3231 }
0x1d5e   :  { %3233 = vrcp.f32 %v2251_v21 }
0x1d68   :  { %v3234_v24 = vpop.eup %3233 }
0x1d69   :  { %v2254_v26 = vsel %vm3507_vm4, %v3232_v22, %v3234_v24 }
0x1d6a   :  { %2257 = vrot.lane.b32.xlu1 %v2254_v26, %s3361_s2  ;;  %v2255_v28 = vmul.f32 %v2254_v26, %v2056_v51 }
0x1ddc   :  { %v2258_v45 = vpop.permute.xlu1 %2257 }
0x1ddd   :  { %v2260_v27 = vmul.f32 %v2258_v45, %v2254_v26 }
0x1ddf   :  { %2262 = vrot.lane.b32.xlu0 %v2260_v27, %s3369_s12 }
0x1e51   :  { %v2263_v29 = vpop.permute.xlu0 %2262 }
0x1e52   :  { %v2265_v30 = vadd.f32 %v2263_v29, %v2255_v28 }
0x1e54   :  { %3235 = vtanh.f32 %v2265_v30 }
0x1e5e   :  { %v3236_v55 = vpop.eup %3235 }
0x1e5f   :  { %2268 = vrot.lane.b32.xlu1 %v3236_v55, %s3361_s2  ;;  %s3327_s2 = scalar_lea.vmem %s2367_s15, 64 }
0x1e60   :  { %p3328_p4 = scmp.ne.s32.totalorder %s2367_s15, %s3327_s2  ;;  %p3333_p6 = scmp.lt.s32.totalorder %s3327_s2, %s3327_s2 }
0x1e62   :  { %p3334_p7 = por %p3333_p6, %p3332_p5 }
0x1e64   :  { %p3335_p8 = pnand %p3334_p7, %p3328_p4 }
0x1ed1   :  { %v2269_v34 = vpop.permute.xlu1 %2268 }
0x1ed2   :  { %v2271_v23 = vmul.f32 %v2269_v34, %v2254_v26 }
0x1ed4   :  { %v2272_v8 = vsel %vm2163_vm12, %v2271_v23, %v2057_v11 }
0x1ed5   :  { %2285 = vrot.lane.b32.xlu0 %v2272_v8, %s3369_s12 }
0x1f47   :  { %v2286_v39 = vpop.permute.xlu0 %2285 }
0x1f48   :  { %2873 = vmatmul.mubr.msk.f32.vlgmr.msra.gmra.mrb[18].mxu1 %vm103_vm6, %v2286_v39 }
0x201b   :  { %v2355_v0 = vpop.f32.mrb[18].mxu1 }
0x201c   :  { %v2356_v43 = vadd.f32 %v2417_v40, %v2355_v0  ;;  %v2874_v44 = vpop.f32.mrb[19].mxu1 }
0x201e   :  { %2359 = vst [vmem:[#allocation10] sm:$0xf] %v2356_v43 }
0x201f   :  { %3338 = shalt.err (!%p3335_p8)
}
0x2020   :  { %s3339_s0 = scalar_lea.hbm %s4179_s7, 64 }
0x2021   :  { %p3340_p9 = scmp.ne.s32.totalorder %s4179_s7, %s3339_s0  ;;  %p3343_p10 = scmp.lt.u32.totalorder %s3339_s0, %s4179_s7 }
0x2023   :  { %p3345_p11 = pnand %p3343_p10, %p3340_p9 }
0x2025   :  { %3348 = shalt.err (!%p3345_p11)
}
0x2026   :  { %2369 = dma.vmem_to_hbm [thread:$0]  %s2367_s15, 64, %s4179_s7, [#allocation4]  }
0x2027   :  { %3355 = dma.done.wait [#allocation4], 64  }
0x2028   :  { %3356 = vsyncadd [#allocation4], 4294967232 }
0x2029   :  { %2373 = vsyncpa [#allocation3], 1 }
0x202a   :  { %2374 = vsyncpa [#allocation6], 1 }
0x202b   :  { %2375 = vsyncpa [#allocation9], 1 }
0x202c   :  { %2376 = vsyncpa [#allocation4], 1 }

</bundles_post_ra>
